<compile_context>
chip_gen: v5e
topology: v5e:2x2
jax: 0.10.0
libtpu: 0.0.40
codegen_flags: <defaults>
</compile_context>

<pallas_src>
import functools

import jax
import jax.numpy as jnp
from jax import lax
from jax.experimental import pallas as pl
from jax.experimental.pallas import tpu as pltpu


def _attention_kernel(k_ref, q_ref, v_ref, att_ref, acc_ref, *, approx_recip):
    # k_ref  : (1, 1, c, N)  key sub-grid for parity group g (resident over j)
    # q_ref  : (1, c, TJ)    query (ee sub-grid) column block
    # v_ref  : (1, c, TJ)    value (conv3 output) column block
    # att_ref: (1, 1, c, N)  attention output for group g (written at last j)
    # acc_ref: (c, N) f32    accumulator over query-column blocks
    j = pl.program_id(2)
    nj = pl.num_programs(2)
    f32 = jnp.float32
    cdt = k_ref.dtype                     # MXU/EUP compute dtype (bf16 fast path)

    k = k_ref[0, 0]                       # (c, N)
    q = q_ref[0]                          # (c, TJ)
    vf = v_ref[0]                         # (c, TJ)

    # scores_t[t, i] = sum_c q[c, t] * K_g[c, i]
    # The large resident key slab is the canonical (k, n) RHS; only the small
    # per-step query block sits on the "transposed" side of the contraction.
    scores = lax.dot_general(q, k, (((0,), (0,)), ((), ())),
                             preferred_element_type=f32)               # (TJ, N)

    # softmax over the key index (torch nn.Softmax(dim=1)) == axis 1 here.
    m = jnp.max(scores, axis=1, keepdims=True)                         # (TJ, 1)
    e = jnp.exp((scores - m).astype(cdt))                              # bf16 EUP on fast path
    s = jnp.sum(e.astype(f32), axis=1, keepdims=True)                  # f32 denominator
    if approx_recip:
        inv_s = pl.reciprocal(s, approx=True)
    else:
        inv_s = 1.0 / s
    wgt = e * inv_s.astype(cdt)                                        # (TJ, N) normalized

    @pl.when(j == 0)
    def _():
        acc_ref[...] = jnp.zeros_like(acc_ref)

    # contrib[c', i] = sum_t vf[c', t] * wgt[t, i]   (canonical (m,k)x(k,n))
    acc_ref[...] += lax.dot_general(vf, wgt, (((1,), (0,)), ((), ())),
                                    preferred_element_type=f32)        # (c, N)

    @pl.when(j == nj - 1)
    def _():
        att_ref[0, 0] = acc_ref[...].astype(att_ref.dtype)


def _sublane_multiple(itemsize):
    return max(8, 32 // max(int(itemsize), 1))


def _pad_up(x, m):
    return ((x + m - 1) // m) * m


def _vmem_budget_bytes():
    cap = 64 * 1024 * 1024                 # conservative default (v7x per-TC VMEM)
    try:
        info = pltpu.get_tpu_info()
        cap = int(getattr(info, "vmem_capacity_bytes", cap) or cap)
    except Exception:
        pass
    return int(cap * 0.85)                 # headroom for compiler-internal scratch


def _footprints(n, c, cdb, odb):
    cp = _pad_up(max(c, 1), _sublane_multiple(cdb))
    # Resident per (batch, group): key block (x2 buffers), att output block
    # (x2 buffers) and the f32 accumulator scratch.
    resident = cp * n * (2 * cdb + 2 * odb + 4)
    # Per query column: q/v blocks (x2 buffers each), f32 scores, exp/weights
    # in the compute dtype, plus small per-column overhead.
    per_col = n * (4 + 2 * cdb) + 4 * cp * cdb + 2 * cp * 4
    return resident, per_col


def _pick_tile_j(n, c, cdb, odb, budget):
    resident, per_col = _footprints(n, c, cdb, odb)
    avail = budget - resident - (2 << 20)
    if avail < 128 * per_col:
        # Resident buffers dominate; smallest lane-dense block.
        return 128 if n % 128 == 0 else n
    max_tj = avail // per_col
    if n <= max_tj:
        return n
    for align in (256, 128):               # prefer 256-wide MXU result tiles
        cands = [t for t in range(align, int(max_tj) + 1, align) if n % t == 0]
        if cands:
            return cands[-1]
    # No lane-aligned divisor fits: fall back to the full extent (still a legal
    # layout) rather than emit masked partial stores.
    # TODO(synk): pad N to a multiple of 128 and mask the tail instead.
    return n


def guidance_block(v, x_2s, params, *, compute_dtype=jnp.bfloat16, tile_j=None):
    """v: (b, in_ch, h, w), x_2s: (b, in_ch//2, 2h, 2w) -- NCHW float32."""
    W1, b1, W2, b2, W3, b3 = params
    b, in_ch, h, w = v.shape
    c = W1.shape[0]
    assert in_ch % 2 == 0 and c == in_ch // 2, (
        "Guidance_block requires out_ch == in_ch // 2 (torch .view constraint)")
    assert W1.shape == (c, c) and W2.shape == (c, c) and W3.shape == (c, in_ch)
    assert x_2s.shape == (b, c, 2 * h, 2 * w)
    N = h * w
    f32 = jnp.float32
    hi = lax.Precision.HIGHEST

    # ---- de-interleave x_2s into the 4 parity sub-grids (one reshape+transpose) ----
    sub = x_2s.reshape(b, c, h, 2, w, 2).transpose(0, 1, 3, 5, 2, 4)   # (b,c,2,2,h,w)
    sub = sub.reshape(b, c, 4, N)                                      # ee,eo,oe,oo

    # ---- hoisted 1x1 convs (XLA fuses them with the de-interleave) ----
    q = jnp.einsum('oc,bcn->bon', W1, sub[:, :, 0, :], precision=hi) \
        + b1[None, :, None]                                            # (b, c, N)
    k = jnp.einsum('oc,bcgn->bgon', W2, sub[:, :, 1:, :], precision=hi) \
        + b2[None, None, :, None]                                      # (b, 3, c, N)
    vf = jnp.einsum('oc,bcn->bon', W3, v.reshape(b, in_ch, N), precision=hi) \
        + b3[None, :, None]                                            # (b, c, N)

    cdt = jnp.dtype(compute_dtype)
    out_dtype = f32 if cdt == jnp.dtype(f32) else cdt      # bf16 writeback on fast path
    cdb = cdt.itemsize
    odb = jnp.dtype(out_dtype).itemsize

    budget = _vmem_budget_bytes()
    TJ = tile_j if tile_j is not None else _pick_tile_j(N, c, cdb, odb, budget)
    assert N % TJ == 0, f"tile_j={TJ} must divide N={N}"
    assert TJ % 128 == 0 or TJ == N, (
        f"tile_j={TJ} must be lane-aligned (multiple of 128) or the full extent {N}")
    nj = N // TJ

    resident, per_col = _footprints(N, c, cdb, odb)
    est = resident + TJ * per_col
    vmem_limit = int(min(budget, max(2 * est, 32 * 1024 * 1024)))

    kernel = functools.partial(_attention_kernel,
                               approx_recip=(cdt != jnp.dtype(f32)))

    att = pl.pallas_call(
        kernel,
        out_shape=jax.ShapeDtypeStruct((b, 3, c, N), out_dtype),
        grid_spec=pltpu.PrefetchScalarGridSpec(
            num_scalar_prefetch=0,
            grid=(b, 3, nj),
            in_specs=[
                pl.BlockSpec((1, 1, c, N), lambda i, g, j: (i, g, 0, 0)),  # keys (resident over j)
                pl.BlockSpec((1, c, TJ), lambda i, g, j: (i, 0, j)),       # query column block
                pl.BlockSpec((1, c, TJ), lambda i, g, j: (i, 0, j)),       # value column block
            ],
            out_specs=pl.BlockSpec((1, 1, c, N), lambda i, g, j: (i, g, 0, 0)),
            scratch_shapes=[pltpu.VMEM((c, N), f32)],                      # f32 accumulator
        ),
        compiler_params=pltpu.CompilerParams(
            dimension_semantics=("parallel", "parallel", "arbitrary"),
            vmem_limit_bytes=vmem_limit),
    )(k.astype(cdt), q.astype(cdt), vf.astype(cdt))

    # ---- re-interleave ee / eo / oe / oo into the 2x-resolution output ----
    full = jnp.concatenate([vf[:, None], att.astype(f32)], axis=1)     # (b,4,c,N)
    blocks = full.reshape(b, 2, 2, c, h, w)                            # (b,pr,pc,c,h,w)
    recon = blocks.transpose(0, 3, 4, 1, 5, 2).reshape(b, c, 2 * h, 2 * w)
    return recon


def reference(v, x_2s, params):
    """Pure-JAX transcription of the PyTorch forward (for verification)."""
    W1, b1, W2, b2, W3, b3 = params
    b, C, h, w = v.shape
    c = C // 2
    hi = lax.Precision.HIGHEST

    def conv1x1(x, W, bias):
        return jnp.einsum('oc,bchw->bohw', W, x, precision=hi) + bias[None, :, None, None]

    vc = conv1x1(v, W3, b3)                                       # (b, c, h, w)
    q = conv1x1(x_2s[:, :, ::2, ::2], W1, b1).reshape(b, c, -1)   # (b, c, N)
    k = conv1x1(x_2s, W2, b2)                                     # (b, c, 2h, 2w)
    v_flat = vc.reshape(b, c, -1).transpose(0, 2, 1)              # (b, N, c)

    def attend(k_sub):
        ks = k_sub.reshape(b, c, -1).transpose(0, 2, 1)           # (b, N, c)
        scores = jnp.einsum('bnc,bcm->bnm', ks, q, precision=hi)  # (b, N, N)
        w_ = jax.nn.softmax(scores, axis=1)                       # dim=1 as in torch
        o = jnp.einsum('bnm,bmc->bnc', w_, v_flat, precision=hi)
        return o.transpose(0, 2, 1).reshape(b, c, h, w)

    recon = jnp.zeros((b, c, 2 * h, 2 * w), jnp.float32)
    recon = recon.at[:, :, ::2, 1::2].set(attend(k[:, :, ::2, 1::2]))
    recon = recon.at[:, :, 1::2, ::2].set(attend(k[:, :, 1::2, ::2]))
    recon = recon.at[:, :, 1::2, 1::2].set(attend(k[:, :, 1::2, 1::2]))
    recon = recon.at[:, :, ::2, ::2].set(vc)
    return recon


if __name__ == "__main__":
    # Lane-friendly small shapes: N = h*w = 256 (multiple of 128), c = 8.
    b, in_ch, h, w = 2, 16, 16, 16
    c = in_ch // 2            # == out_ch (required by the torch .view calls)

    key = jax.random.PRNGKey(0)
    kv, kx, k0, k1, k2, k3, k4, k5 = jax.random.split(key, 8)
    v = jax.random.normal(kv, (b, in_ch, h, w), jnp.float32)
    x_2s = jax.random.normal(kx, (b, c, 2 * h, 2 * w), jnp.float32)

    # Deterministic synthetic parameters (Conv2d 1x1 weights folded to 2-D).
    W1 = 0.25 * jax.random.normal(k0, (c, c), jnp.float32)
    b1 = 0.1 * jax.random.normal(k1, (c,), jnp.float32)
    W2 = 0.25 * jax.random.normal(k2, (c, c), jnp.float32)
    b2 = 0.1 * jax.random.normal(k3, (c,), jnp.float32)
    W3 = 0.25 * jax.random.normal(k4, (c, in_ch), jnp.float32)
    b3 = 0.1 * jax.random.normal(k5, (c,), jnp.float32)
    params = (W1, b1, W2, b2, W3, b3)

    ref = reference(v, x_2s, params)

    # 1) exact-math path (f32 operands), single query-column block.
    f32_fn = jax.jit(functools.partial(guidance_block, compute_dtype=jnp.float32))
    out_f32 = jax.block_until_ready(f32_fn(v, x_2s, params))
    assert out_f32.shape == (b, c, 2 * h, 2 * w)
    err = float(jnp.max(jnp.abs(out_f32 - ref)))
    assert err < 1e-4, f"f32 path max abs err {err}"

    # 2) exact-math path with forced lane-aligned tiling (tile_j=128 -> nj=2):
    #    exercises the j-axis scratch accumulation used to bound VMEM at large N.
    tiled_fn = jax.jit(functools.partial(guidance_block,
                                         compute_dtype=jnp.float32, tile_j=128))
    out_tiled = jax.block_until_ready(tiled_fn(v, x_2s, params))
    err_t = float(jnp.max(jnp.abs(out_tiled - ref)))
    assert err_t < 1e-4, f"tiled f32 path max abs err {err_t}"

    # 3) default fast path: bf16 operands, bf16 exp, f32 accumulation, bf16 writeback.
    fast_fn = jax.jit(guidance_block)
    out = jax.block_until_ready(fast_fn(v, x_2s, params))
    scale = float(jnp.max(jnp.abs(ref)))
    err_b = float(jnp.max(jnp.abs(out - ref)))
    assert err_b < 0.06 * max(scale, 1.0), (
        f"bf16 path max abs err {err_b} (ref scale {scale})")

    print("KERNEL_OK")
</pallas_src>

<mosaic_0001>
module attributes {stable_mosaic.version = 11 : i64} {
  func.func @_attention_kernel(%arg0: i32, %arg1: i32, %arg2: i32, %arg3: memref<1x1x8x256xf32, #tpu.memory_space<vmem>>, %arg4: memref<1x8x256xf32, #tpu.memory_space<vmem>>, %arg5: memref<1x8x256xf32, #tpu.memory_space<vmem>>, %arg6: memref<1x1x8x256xf32, #tpu.memory_space<vmem>>, %arg7: memref<8x256xf32, #tpu.memory_space<vmem>>) attributes {dimension_semantics = [#tpu.dimension_semantics<parallel>, #tpu.dimension_semantics<parallel>, #tpu.dimension_semantics<arbitrary>], iteration_bounds = array<i64: 2, 3, 1>, scalar_prefetch = 0 : i64, scratch_operands = 1 : i64, tpu.core_type = #tpu.core_type<tc>, window_params = [{transform_indices = @transform_0, window_bounds = array<i64: 1, 1, 8, 256>}, {transform_indices = @transform_1, window_bounds = array<i64: 1, 8, 256>}, {transform_indices = @transform_2, window_bounds = array<i64: 1, 8, 256>}, {transform_indices = @transform_3, window_bounds = array<i64: 1, 1, 8, 256>}]} {
    %c0 = arith.constant 0 : index
    %c0_0 = arith.constant 0 : index
    %c0_1 = arith.constant 0 : index
    %c0_2 = arith.constant 0 : index
    %0 = vector.load %arg3[%c0, %c0_0, %c0_1, %c0_2] : memref<1x1x8x256xf32, #tpu.memory_space<vmem>>, vector<1x1x8x256xf32>
    %1 = vector.shape_cast %0 : vector<1x1x8x256xf32> to vector<8x256xf32>
    %c0_3 = arith.constant 0 : index
    %c0_4 = arith.constant 0 : index
    %c0_5 = arith.constant 0 : index
    %2 = vector.load %arg4[%c0_3, %c0_4, %c0_5] : memref<1x8x256xf32, #tpu.memory_space<vmem>>, vector<1x8x256xf32>
    %3 = vector.shape_cast %2 : vector<1x8x256xf32> to vector<8x256xf32>
    %c0_6 = arith.constant 0 : index
    %c0_7 = arith.constant 0 : index
    %c0_8 = arith.constant 0 : index
    %4 = vector.load %arg5[%c0_6, %c0_7, %c0_8] : memref<1x8x256xf32, #tpu.memory_space<vmem>>, vector<1x8x256xf32>
    %5 = vector.shape_cast %4 : vector<1x8x256xf32> to vector<8x256xf32>
    %cst = arith.constant dense<0.000000e+00> : vector<256x256xf32>
    %6 = tpu.matmul %3, %1, %cst {dimension_numbers = #tpu.dot_dimension_numbers<[0], [0], [1], [1], [0, 1, 1, 1], [], []>} : vector<8x256xf32>, vector<8x256xf32>, vector<256x256xf32> -> vector<256x256xf32>
    %cst_9 = arith.constant dense<0xFF800000> : vector<256xf32>
    %7 = vector.multi_reduction <maximumf>, %6, %cst_9 [1] : vector<256x256xf32> to vector<256xf32>
    %8 = vector.shape_cast %7 : vector<256xf32> to vector<256x1xf32>
    %9 = vector.broadcast %8 : vector<256x1xf32> to vector<256x256xf32>
    %10 = arith.subf %6, %9 : vector<256x256xf32>
    %11 = math.exp %10 : vector<256x256xf32>
    %cst_10 = arith.constant dense<0.000000e+00> : vector<256xf32>
    %12 = vector.multi_reduction <add>, %11, %cst_10 [1] : vector<256x256xf32> to vector<256xf32>
    %13 = vector.shape_cast %12 : vector<256xf32> to vector<256x1xf32>
    %cst_11 = arith.constant 1.000000e+00 : f32
    %14 = vector.broadcast %cst_11 : f32 to vector<256x1xf32>
    %15 = arith.divf %14, %13 : vector<256x1xf32>
    %16 = vector.broadcast %15 : vector<256x1xf32> to vector<256x256xf32>
    %17 = arith.mulf %11, %16 : vector<256x256xf32>
    %c0_i32 = arith.constant 0 : i32
    %18 = arith.cmpi eq, %arg2, %c0_i32 : i32
    %19 = arith.extui %18 : i1 to i32
    %c0_i32_12 = arith.constant 0 : i32
    %20 = arith.cmpi ne, %19, %c0_i32_12 : i32
    scf.if %20 {
      %cst_20 = arith.constant 0.000000e+00 : f32
      %28 = vector.broadcast %cst_20 : f32 to vector<8x256xf32>
      %c0_21 = arith.constant 0 : index
      %c0_22 = arith.constant 0 : index
      %29 = vector.load %arg7[%c0_21, %c0_22] : memref<8x256xf32, #tpu.memory_space<vmem>>, vector<8x256xf32>
      tpu.vector_store %arg7[%c0_21, %c0_22], %28 {strides = array<i32>} : memref<8x256xf32, #tpu.memory_space<vmem>>, vector<8x256xf32>,
    } else {
    }
    %c0_13 = arith.constant 0 : index
    %c0_14 = arith.constant 0 : index
    %21 = vector.load %arg7[%c0_13, %c0_14] : memref<8x256xf32, #tpu.memory_space<vmem>>, vector<8x256xf32>
    %cst_15 = arith.constant dense<0.000000e+00> : vector<8x256xf32>
    %22 = tpu.matmul %5, %17, %cst_15 {dimension_numbers = #tpu.dot_dimension_numbers<[1], [0], [0], [1], [0, 0, 1, 1], [], []>} : vector<8x256xf32>, vector<256x256xf32>, vector<8x256xf32> -> vector<8x256xf32>
    %23 = arith.addf %21, %22 : vector<8x256xf32>
    %c0_16 = arith.constant 0 : index
    %c0_17 = arith.constant 0 : index
    %24 = vector.load %arg7[%c0_16, %c0_17] : memref<8x256xf32, #tpu.memory_space<vmem>>, vector<8x256xf32>
    tpu.vector_store %arg7[%c0_16, %c0_17], %23 {strides = array<i32>} : memref<8x256xf32, #tpu.memory_space<vmem>>, vector<8x256xf32>,
    %c0_i32_18 = arith.constant 0 : i32
    %25 = arith.cmpi eq, %arg2, %c0_i32_18 : i32
    %26 = arith.extui %25 : i1 to i32
    %c0_i32_19 = arith.constant 0 : i32
    %27 = arith.cmpi ne, %26, %c0_i32_19 : i32
    scf.if %27 {
      %c0_20 = arith.constant 0 : index
      %c0_21 = arith.constant 0 : index
      %28 = vector.load %arg7[%c0_20, %c0_21] : memref<8x256xf32, #tpu.memory_space<vmem>>, vector<8x256xf32>
      %c0_22 = arith.constant 0 : index
      %c0_23 = arith.constant 0 : index
      %c0_24 = arith.constant 0 : index
      %c0_25 = arith.constant 0 : index
      %29 = vector.load %arg6[%c0_22, %c0_23, %c0_24, %c0_25] : memref<1x1x8x256xf32, #tpu.memory_space<vmem>>, vector<1x1x8x256xf32>
      %30 = vector.shape_cast %29 : vector<1x1x8x256xf32> to vector<8x256xf32>
      %31 = vector.shape_cast %28 : vector<8x256xf32> to vector<1x1x8x256xf32>
      tpu.vector_store %arg6[%c0_22, %c0_23, %c0_24, %c0_25], %31 {strides = array<i32>} : memref<1x1x8x256xf32, #tpu.memory_space<vmem>>, vector<1x1x8x256xf32>,
    } else {
    }
    return
  }
  func.func @transform_0(%arg0: i32, %arg1: i32, %arg2: i32) -> (i32, i32, i32, i32) {
    %c0_i32 = arith.constant 0 : i32
    %c0_i32_0 = arith.constant 0 : i32
    %c0_i32_1 = arith.constant 0 : i32
    return %arg0, %arg1, %c0_i32, %c0_i32_0 : i32, i32, i32, i32
  }
  func.func @transform_1(%arg0: i32, %arg1: i32, %arg2: i32) -> (i32, i32, i32) {
    %c0_i32 = arith.constant 0 : i32
    %c0_i32_0 = arith.constant 0 : i32
    return %arg0, %c0_i32, %arg2 : i32, i32, i32
  }
  func.func @transform_2(%arg0: i32, %arg1: i32, %arg2: i32) -> (i32, i32, i32) {
    %c0_i32 = arith.constant 0 : i32
    %c0_i32_0 = arith.constant 0 : i32
    return %arg0, %c0_i32, %arg2 : i32, i32, i32
  }
  func.func @transform_3(%arg0: i32, %arg1: i32, %arg2: i32) -> (i32, i32, i32, i32) {
    %c0_i32 = arith.constant 0 : i32
    %c0_i32_0 = arith.constant 0 : i32
    %c0_i32_1 = arith.constant 0 : i32
    return %arg0, %arg1, %c0_i32, %c0_i32_0 : i32, i32, i32, i32
  }
}

</mosaic_0001>

<bundles_post_ra>
// kernel: guidance_block.1
= control target key start
LH: loop header
LB: loop body
LE: loop exit
PB: predicated region body
PF: predicated region fallthrough
CT: control target
= control target key end

     0   :  { %s2217_s12 = smov 0   ;;  %s2219_s13 = smov 0   ;;  %s3867_s0 = inlined_call_operand.vmem [shape: f32[2,3,8,256], index: 0, kind: input, shape index: {}]   ;;  %s3868_s1 = inlined_call_operand.vmem [shape: f32[2,8,256], index: 1, kind: input, shape index: {}]   ;;  %s3869_s2 = inlined_call_operand.vmem [shape: f32[2,8,256], index: 2, kind: input, shape index: {}]   ;;  %s3870_s3 = inlined_call_operand.vmem [shape: f32[2,3,8,256], index: 3, kind: output, shape index: {}]  }
   0x1   :  { %s2221_s14 = smov 0   ;;  %s2223_s15 = smov 0  }
   0x2   :  { %s2225_s16 = smov 0  }
   0x3 LB: > { %s28_s17 = sadd.s32 1, %s2187_s14  ;;  %s32_s18 = sadd.s32 1, %s2191_s15  ;;  %s2195_s16 = sphi %s2225_s16, %s13_s16   ;;  %s2191_s15 = sphi %s2223_s15, %s4199_s15   ;;  %s2187_s14 = sphi %s2221_s14, %s4198_s14   ;;  %s2183_s13 = sphi %s2219_s13, %s4197_s13   ;;  %s2179_s12 = sphi %s2217_s12, %s4196_s12  }
   0x4   : > { %p30_p0 = scmp.ge.s32.totalorder %s28_s17, 3  ;;  %p1844_p1 = scmp.ge.s32.totalorder %s2195_s16, 1 }
   0x5   : > { %p198_p2 = scmp.lt.s32.totalorder %s2195_s16, 7 }
   0x6   : > { %s4201_s17 = smov (%p30_p0, %s28_s17), 0  ;;  %s4203_s18 = smov (!%p30_p0, %s32_s18), %s2191_s15 }
   0x7   : > { %p199_p3 = pnand %p1844_p1, %p198_p2  ;;  %p34_p4 = scmp.ge.s32.totalorder %s4203_s18, 2 }
   0x9   : > { %s4205_s18 = smov (%p34_p4, %s4203_s18), 0  ;;  %202 = sbr.rel (%p199_p3) target bundleno = 1104 (0x450), region = 32 }
   0xe   : > { %p248_p5 = scmp.lt.s32.totalorder %s2183_s13, 1  ;;  %p250_p6 = scmp.lt.s32.totalorder %s2179_s12, 2  ;;  %vm356_vm0 = vcmask 64512  }
  0x10   : > { %s4207_s13 = smov (!%p248_p5, %s2183_s13), 1  ;;  %s4209_s12 = smov (!%p250_p6, %s2179_s12), 2 }
  0x11   : > { %s1919_s19 = sshll.u32 %s4207_s13, 4  ;;  %s1923_s23 = smul.u32 6, %s4207_s13 }
  0x12   : > { %s265_s22 = scalar_lea.vmem %s3868_s1, %s1919_s19  ;;  %s1845_s24 = sshll.u32 %s4209_s12, 1 }
  0x13   : > { %v288_v0 = vld [vmem:[%s265_s22] sm:$0xff]  ;;  %s2256_s25 = sadd.s32 %s1923_s23, %s1845_s24  ;;  %v289_v1 = vld [vmem:[%s265_s22 + $0x8] sm:$0xff]  ;;  %s275_s5 = scalar_lea.vmem %s3869_s2, %s1919_s19 }
  0x14   : > { %292 = vxpose.xlu0.b32.start.end [1/1] (short) %v288_v0, 128  ;;  %s1846_s26 = sshll.u32 %s2256_s25, 3 }
  0x15   : > { %s256_s29 = scalar_lea.vmem %s3867_s0, %s1846_s26  ;;  %s285_s8 = scalar_lea.vmem %s3870_s3, %s1846_s26 }
  0x16   : > { %v286_v2 = vld [vmem:[%s256_s29] sm:$0xff]  ;;  %v287_v3 = vld [vmem:[%s256_s29 + $0x8] sm:$0xff] }
  0x17   : > { %468 = vmatpush.msra.mxu0 %v286_v2  ;;  %581 = vmatpush.msra.mxu1 %v287_v3 }
  0x18   : > { %1922 = vmatpush.msra.mxu3 %v287_v3  ;;  %1921 = vmatpush.msra.mxu2 %v286_v2 }
  0x94   : > { %324 = vxpose.xlu0.b32.start.end [1/1] (short) %v289_v1, 128 }
  0xb8   : > { %v308_v4 = vpop.trf.xlu0 }
  0xb9   : > { %1853 = vmatmul.msk.f32.vlgmr.msra.gmra.mxu0 %vm356_vm0, %v308_v4  ;;  %1885 = vmatmul.msk.f32.vlgmr.msra.gmra.mxu1 %vm356_vm0, %v308_v4 }
  0xc0   : > { %v309_v5 = vpop.trf.xlu0 }
  0xc1   : > { %1854 = vmatmul.msk.f32.gmra.mxu0 %vm356_vm0, %v309_v5  ;;  %1886 = vmatmul.msk.f32.gmra.mxu1 %vm356_vm0, %v309_v5 }
  0xc8   : > { %v310_v6 = vpop.trf.xlu0 }
  0xc9   : > { %1855 = vmatmul.msk.f32.gmra.mxu0 %vm356_vm0, %v310_v6  ;;  %1887 = vmatmul.msk.f32.gmra.mxu1 %vm356_vm0, %v310_v6 }
  0xd0   : > { %v311_v7 = vpop.trf.xlu0 }
  0xd1   : > { %1856 = vmatmul.msk.f32.gmra.mxu0 %vm356_vm0, %v311_v7  ;;  %1888 = vmatmul.msk.f32.gmra.mxu1 %vm356_vm0, %v311_v7 }
  0xd8   : > { %v312_v8 = vpop.trf.xlu0 }
  0xd9   : > { %1857 = vmatmul.msk.f32.gmra.mxu0 %vm356_vm0, %v312_v8  ;;  %1889 = vmatmul.msk.f32.gmra.mxu1 %vm356_vm0, %v312_v8 }
  0xe0   : > { %v313_v9 = vpop.trf.xlu0 }
  0xe1   : > { %1858 = vmatmul.msk.f32.gmra.mxu0 %vm356_vm0, %v313_v9  ;;  %1890 = vmatmul.msk.f32.gmra.mxu1 %vm356_vm0, %v313_v9 }
  0xe8   : > { %v314_v10 = vpop.trf.xlu0 }
  0xe9   : > { %1859 = vmatmul.msk.f32.gmra.mxu0 %vm356_vm0, %v314_v10  ;;  %1891 = vmatmul.msk.f32.gmra.mxu1 %vm356_vm0, %v314_v10 }
  0xf0   : > { %v315_v11 = vpop.trf.xlu0 }
  0xf1   : > { %1860 = vmatmul.msk.f32.gmra.mxu0 %vm356_vm0, %v315_v11  ;;  %1892 = vmatmul.msk.f32.gmra.mxu1 %vm356_vm0, %v315_v11 }
  0xf8   : > { %v316_v12 = vpop.trf.xlu0 }
  0xf9   : > { %1861 = vmatmul.msk.f32.gmra.mxu0 %vm356_vm0, %v316_v12  ;;  %1893 = vmatmul.msk.f32.gmra.mxu1 %vm356_vm0, %v316_v12 }
 0x100   : > { %v317_v13 = vpop.trf.xlu0 }
 0x101   : > { %1862 = vmatmul.msk.f32.gmra.mxu0 %vm356_vm0, %v317_v13  ;;  %1894 = vmatmul.msk.f32.gmra.mxu1 %vm356_vm0, %v317_v13 }
 0x108   : > { %v318_v14 = vpop.trf.xlu0 }
 0x109   : > { %1863 = vmatmul.msk.f32.gmra.mxu0 %vm356_vm0, %v318_v14  ;;  %1895 = vmatmul.msk.f32.gmra.mxu1 %vm356_vm0, %v318_v14 }
 0x110   : > { %v319_v15 = vpop.trf.xlu0 }
 0x111   : > { %1864 = vmatmul.msk.f32.gmra.mxu0 %vm356_vm0, %v319_v15  ;;  %1896 = vmatmul.msk.f32.gmra.mxu1 %vm356_vm0, %v319_v15 }
 0x118   : > { %v320_v16 = vpop.trf.xlu0 }
 0x119   : > { %1865 = vmatmul.msk.f32.gmra.mxu0 %vm356_vm0, %v320_v16  ;;  %1897 = vmatmul.msk.f32.gmra.mxu1 %vm356_vm0, %v320_v16 }
 0x120   : > { %v321_v17 = vpop.trf.xlu0 }
 0x121   : > { %1866 = vmatmul.msk.f32.gmra.mxu0 %vm356_vm0, %v321_v17  ;;  %1898 = vmatmul.msk.f32.gmra.mxu1 %vm356_vm0, %v321_v17 }
 0x128   : > { %v322_v18 = vpop.trf.xlu0 }
 0x129   : > { %1867 = vmatmul.msk.f32.gmra.mxu0 %vm356_vm0, %v322_v18  ;;  %1899 = vmatmul.msk.f32.gmra.mxu1 %vm356_vm0, %v322_v18 }
 0x130   : > { %v323_v19 = vpop.trf.xlu0 }
 0x131   : > { %1868 = vmatmul.msk.f32.gmra.mxu0 %vm356_vm0, %v323_v19  ;;  %1900 = vmatmul.msk.f32.gmra.mxu1 %vm356_vm0, %v323_v19 }
 0x136   : > { %v2296_v20 = vpop.f32.mrf.mxu0  ;;  %v2298_v21 = vpop.f32.mrf.mxu1 }
 0x137   : > { %3950 = vst [vmem:[#allocation3_spill] sm:$0xff] %v2296_v20  ;;  %v679_v22 = vmax.f32 %v2296_v20, %v2298_v21 }
 0x138   : > { %3951 = vst [vmem:[#allocation4_spill] sm:$0xff] %v2298_v21  ;;  %v340_v23 = vpop.trf.xlu0 }
 0x139   : > { %1869 = vmatmul.msk.f32.gmra.mxu0 %vm356_vm0, %v340_v23  ;;  %1901 = vmatmul.msk.f32.gmra.mxu1 %vm356_vm0, %v340_v23 }
 0x13a   : > { %680 = vmax.xlane.f32.xlu1 %v679_v22 }
 0x13e   : > { %v2304_v24 = vpop.f32.mrf.mxu0  ;;  %v2306_v25 = vpop.f32.mrf.mxu1 }
 0x13f   : > { %3952 = vst [vmem:[#allocation5_spill] sm:$0xff] %v2304_v24  ;;  %v682_v26 = vmax.f32 %v2304_v24, %v2306_v25 }
 0x140   : > { %3953 = vst [vmem:[#allocation6_spill] sm:$0xff] %v2306_v25  ;;  %v341_v27 = vpop.trf.xlu0 }
 0x141   : > { %1870 = vmatmul.msk.f32.gmra.mxu0 %vm356_vm0, %v341_v27  ;;  %1902 = vmatmul.msk.f32.gmra.mxu1 %vm356_vm0, %v341_v27 }
 0x142   : > { %683 = vmax.xlane.f32.xlu1 %v682_v26 }
 0x146   : > { %v2312_v28 = vpop.f32.mrf.mxu0  ;;  %v2314_v29 = vpop.f32.mrf.mxu1 }
 0x147   : > { %v685_v30 = vmax.f32 %v2312_v28, %v2314_v29 }
 0x148   : > { %v342_v31 = vpop.trf.xlu0 }
 0x149   : > { %1871 = vmatmul.msk.f32.gmra.mxu0 %vm356_vm0, %v342_v31  ;;  %1903 = vmatmul.msk.f32.gmra.mxu1 %vm356_vm0, %v342_v31 }
 0x14a   : > { %686 = vmax.xlane.f32.xlu1 %v685_v30 }
 0x14e   : > { %v2320_v32 = vpop.f32.mrf.mxu0  ;;  %v2322_v33 = vpop.f32.mrf.mxu1 }
 0x14f   : > { %v688_v34 = vmax.f32 %v2320_v32, %v2322_v33 }
 0x150   : > { %v343_v35 = vpop.trf.xlu0 }
 0x151   : > { %1872 = vmatmul.msk.f32.gmra.mxu0 %vm356_vm0, %v343_v35  ;;  %1904 = vmatmul.msk.f32.vlgmr.msra.gmra.mxu3 %vm356_vm0, %v343_v35 }
 0x152   : > { %689 = vmax.xlane.f32.xlu1 %v688_v34 }
 0x156   : > { %v2328_v36 = vpop.f32.mrf.mxu0  ;;  %v2330_v37 = vpop.f32.mrf.mxu1 }
 0x157   : > { %v691_v38 = vmax.f32 %v2328_v36, %v2330_v37 }
 0x158   : > { %v344_v39 = vpop.trf.xlu0 }
 0x159   : > { %1873 = vmatmul.msk.f32.vlgmr.msra.gmra.mxu2 %vm356_vm0, %v344_v39  ;;  %1905 = vmatmul.msk.f32.gmra.mxu3 %vm356_vm0, %v344_v39 }
 0x15a   : > { %692 = vmax.xlane.f32.xlu1 %v691_v38 }
 0x15e   : > { %v2336_v40 = vpop.f32.mrf.mxu0  ;;  %v2338_v41 = vpop.f32.mrf.mxu1 }
 0x15f   : > { %v694_v42 = vmax.f32 %v2336_v40, %v2338_v41 }
 0x160   : > { %v345_v43 = vpop.trf.xlu0 }
 0x161   : > { %1874 = vmatmul.msk.f32.gmra.mxu2 %vm356_vm0, %v345_v43  ;;  %1906 = vmatmul.msk.f32.gmra.mxu3 %vm356_vm0, %v345_v43 }
 0x162   : > { %695 = vmax.xlane.f32.xlu1 %v694_v42 }
 0x166   : > { %v2344_v44 = vpop.f32.mrf.mxu0  ;;  %v2346_v45 = vpop.f32.mrf.mxu1 }
 0x167   : > { %v697_v46 = vmax.f32 %v2344_v44, %v2346_v45 }
 0x168   : > { %v346_v47 = vpop.trf.xlu0 }
 0x169   : > { %1875 = vmatmul.msk.f32.gmra.mxu2 %vm356_vm0, %v346_v47  ;;  %1907 = vmatmul.msk.f32.gmra.mxu3 %vm356_vm0, %v346_v47 }
 0x16a   : > { %698 = vmax.xlane.f32.xlu1 %v697_v46 }
 0x16e   : > { %v2352_v48 = vpop.f32.mrf.mxu0  ;;  %v2354_v49 = vpop.f32.mrf.mxu1 }
 0x16f   : > { %v700_v50 = vmax.f32 %v2352_v48, %v2354_v49 }
 0x170   : > { %v347_v51 = vpop.trf.xlu0 }
 0x171   : > { %1876 = vmatmul.msk.f32.gmra.mxu2 %vm356_vm0, %v347_v51  ;;  %1908 = vmatmul.msk.f32.gmra.mxu3 %vm356_vm0, %v347_v51 }
 0x172   : > { %701 = vmax.xlane.f32.xlu1 %v700_v50 }
 0x176   : > { %v2360_v52 = vpop.f32.mrf.mxu0  ;;  %v2362_v53 = vpop.f32.mrf.mxu1 }
 0x177   : > { %v703_v54 = vmax.f32 %v2360_v52, %v2362_v53 }
 0x178   : > { %v348_v55 = vpop.trf.xlu0 }
 0x179   : > { %1877 = vmatmul.msk.f32.gmra.mxu2 %vm356_vm0, %v348_v55  ;;  %1909 = vmatmul.msk.f32.gmra.mxu3 %vm356_vm0, %v348_v55 }
 0x17a   : > { %704 = vmax.xlane.f32.xlu1 %v703_v54 }
 0x17e   : > { %v2368_v56 = vpop.f32.mrf.mxu0  ;;  %v2370_v57 = vpop.f32.mrf.mxu1 }
 0x17f   : > { %v706_v58 = vmax.f32 %v2368_v56, %v2370_v57 }
 0x180   : > { %v349_v59 = vpop.trf.xlu0 }
 0x181   : > { %1878 = vmatmul.msk.f32.gmra.mxu2 %vm356_vm0, %v349_v59  ;;  %1910 = vmatmul.msk.f32.gmra.mxu3 %vm356_vm0, %v349_v59 }
 0x182   : > { %707 = vmax.xlane.f32.xlu1 %v706_v58 }
 0x186   : > { %v2376_v60 = vpop.f32.mrf.mxu0  ;;  %v2378_v61 = vpop.f32.mrf.mxu1 }
 0x187   : > { %v709_v62 = vmax.f32 %v2376_v60, %v2378_v61 }
 0x188   : > { %v350_v63 = vpop.trf.xlu0 }
 0x189   : > { %1879 = vmatmul.msk.f32.gmra.mxu2 %vm356_vm0, %v350_v63  ;;  %1911 = vmatmul.msk.f32.gmra.mxu3 %vm356_vm0, %v350_v63 }
 0x18a   : > { %710 = vmax.xlane.f32.xlu1 %v709_v62 }
 0x18e   : > { %v2384_v0 = vpop.f32.mrf.mxu0  ;;  %v2386_v1 = vpop.f32.mrf.mxu1 }
 0x18f   : > { %v712_v2 = vmax.f32 %v2384_v0, %v2386_v1 }
 0x190   : > { %v351_v3 = vpop.trf.xlu0 }
 0x191   : > { %1880 = vmatmul.msk.f32.gmra.mxu2 %vm356_vm0, %v351_v3  ;;  %1912 = vmatmul.msk.f32.gmra.mxu3 %vm356_vm0, %v351_v3 }
 0x192   : > { %713 = vmax.xlane.f32.xlu1 %v712_v2 }
 0x196   : > { %v2392_v4 = vpop.f32.mrf.mxu0  ;;  %v2394_v5 = vpop.f32.mrf.mxu1 }
 0x197   : > { %v715_v6 = vmax.f32 %v2392_v4, %v2394_v5 }
 0x198   : > { %v352_v7 = vpop.trf.xlu0 }
 0x199   : > { %1881 = vmatmul.msk.f32.gmra.mxu2 %vm356_vm0, %v352_v7  ;;  %1913 = vmatmul.msk.f32.gmra.mxu3 %vm356_vm0, %v352_v7 }
 0x19a   : > { %716 = vmax.xlane.f32.xlu1 %v715_v6 }
 0x19e   : > { %v2400_v8 = vpop.f32.mrf.mxu0  ;;  %v2402_v9 = vpop.f32.mrf.mxu1 }
 0x19f   : > { %v718_v10 = vmax.f32 %v2400_v8, %v2402_v9 }
 0x1a0   : > { %v353_v11 = vpop.trf.xlu0 }
 0x1a1   : > { %1882 = vmatmul.msk.f32.gmra.mxu2 %vm356_vm0, %v353_v11  ;;  %1914 = vmatmul.msk.f32.gmra.mxu3 %vm356_vm0, %v353_v11 }
 0x1a2   : > { %719 = vmax.xlane.f32.xlu1 %v718_v10 }
 0x1a6   : > { %v2408_v12 = vpop.f32.mrf.mxu0  ;;  %v2410_v13 = vpop.f32.mrf.mxu1 }
 0x1a8   : > { %v354_v14 = vpop.trf.xlu0 }
 0x1a9   : > { %1883 = vmatmul.msk.f32.gmra.mxu2 %vm356_vm0, %v354_v14  ;;  %1915 = vmatmul.msk.f32.gmra.mxu3 %vm356_vm0, %v354_v14 }
 0x1ad   : > { %v2422_v19 = vpop.xlane.xlu1 %680 }
 0x1ae   : > { %v2414_v15 = vpop.f32.mrf.mxu0  ;;  %v2416_v16 = vpop.f32.mrf.mxu1  ;;  %3956 = vst [vmem:[#allocation9_spill] sm:$0xff] %v2422_v19 }
 0x1af   : > { %3954 = vst [vmem:[#allocation7_spill] sm:$0xff] %v2414_v15  ;;  %v724_v17 = vmax.f32 %v2414_v15, %v2416_v16 }
 0x1b0   : > { %3955 = vst [vmem:[#allocation8_spill] sm:$0xff] %v2416_v16  ;;  %v355_v18 = vpop.trf.xlu0 }
 0x1b1   : > { %1884 = vmatmul.msk.f32.gmra.mxu2 %vm356_vm0, %v355_v18  ;;  %1916 = vmatmul.msk.f32.gmra.mxu3 %vm356_vm0, %v355_v18 }
 0x1b2   : > { %725 = vmax.xlane.f32.xlu1 %v724_v17 }
 0x1b5   : > { %v2424_v22 = vpop.xlane.xlu1 %683 }
 0x1b6   : > { %3957 = vst [vmem:[#allocation10_spill] sm:$0xff] %v2424_v22  ;;  %v2518_v21 = vpop.f32.mrf.mxu0  ;;  %v2520_v20 = vpop.f32.mrf.mxu1 }
 0x1b7   : > { %3968 = vst [vmem:[#allocation21_spill] sm:$0xff] %v2518_v21 }
 0x1b8   : > { %3969 = vst [vmem:[#allocation22_spill] sm:$0xff] %v2520_v20 }
 0x1bd   : > { %v2428_v26 = vpop.xlane.xlu1 %686 }
 0x1c5   : > { %v2436_v34 = vpop.xlane.xlu1 %689 }
 0x1cd   : > { %v2448_v46 = vpop.xlane.xlu1 %692 }
 0x1d4   : > { %v2426_v23 = vpop.f32.mrf.mxu3 }
 0x1d5   : > { %v2458_v55 = vpop.xlane.xlu1 %695 }
 0x1dc   : > { %v2430_v27 = vpop.f32.mrf.mxu2  ;;  %v2432_v30 = vpop.f32.mrf.mxu3 }
 0x1dd   : > { %3958 = vst [vmem:[#allocation11_spill] sm:$0xff] %v2430_v27  ;;  %v739_v31 = vmax.f32 %v2430_v27, %v2432_v30  ;;  %v2466_v63 = vpop.xlane.xlu1 %698 }
 0x1de   : > { %3959 = vst [vmem:[#allocation12_spill] sm:$0xff] %v2432_v30 }
 0x1df   : > { %740 = vmax.xlane.f32.xlu2 %v739_v31 }
 0x1e4   : > { %v2438_v35 = vpop.f32.mrf.mxu2  ;;  %v2440_v38 = vpop.f32.mrf.mxu3 }
 0x1e5   : > { %3960 = vst [vmem:[#allocation13_spill] sm:$0xff] %v2438_v35  ;;  %v742_v39 = vmax.f32 %v2438_v35, %v2440_v38  ;;  %v2474_v7 = vpop.xlane.xlu1 %701 }
 0x1e6   : > { %3961 = vst [vmem:[#allocation14_spill] sm:$0xff] %v2440_v38  ;;  %v721_v38 = vmax.f32 %v2408_v12, %v2410_v13 }
 0x1e7   : > { %743 = vmax.xlane.f32.xlu2 %v742_v39 }
 0x1ec   : > { %v2444_v42 = vpop.f32.mrf.mxu2  ;;  %v2446_v43 = vpop.f32.mrf.mxu3 }
 0x1ed   : > { %3962 = vst [vmem:[#allocation15_spill] sm:$0xff] %v2444_v42  ;;  %v745_v47 = vmax.f32 %v2444_v42, %v2446_v43  ;;  %v2486_v31 = vpop.xlane.xlu1 %704 }
 0x1ee   : > { %3963 = vst [vmem:[#allocation16_spill] sm:$0xff] %v2446_v43 }
 0x1ef   : > { %746 = vmax.xlane.f32.xlu2 %v745_v47 }
 0x1f4   : > { %v2452_v50 = vpop.f32.mrf.mxu2  ;;  %v2454_v51 = vpop.f32.mrf.mxu3 }
 0x1f5   : > { %3964 = vst [vmem:[#allocation17_spill] sm:$0xff] %v2452_v50  ;;  %v748_v54 = vmax.f32 %v2452_v50, %v2454_v51 }
 0x1f6   : > { %3965 = vst [vmem:[#allocation18_spill] sm:$0xff] %v2454_v51  ;;  %v2524_v51 = vpop.f32.mrf.mxu0 }
 0x1f7   : > { %749 = vmax.xlane.f32.xlu2 %v748_v54  ;;  %3970 = vst [vmem:[#allocation23_spill] sm:$0xff] %v2524_v51 }
 0x1fc   : > { %v2460_v58 = vpop.f32.mrf.mxu2  ;;  %v2462_v59 = vpop.f32.mrf.mxu3 }
 0x1fd   : > { %v751_v62 = vmax.f32 %v2460_v58, %v2462_v59 }
 0x1fe   : > { %v2530_v25 = vpop.f32.mrf.mxu0 }
 0x1ff   : > { %752 = vmax.xlane.f32.xlu2 %v751_v62 }
 0x204   : > { %v2468_v2 = vpop.f32.mrf.mxu2  ;;  %v2470_v3 = vpop.f32.mrf.mxu3 }
 0x205   : > { %v754_v6 = vmax.f32 %v2468_v2, %v2470_v3 }
 0x207   : > { %755 = vmax.xlane.f32.xlu2 %v754_v6  ;;  %v2496_v6 = vpop.xlane.xlu1 %707 }
 0x20c   : > { %v2476_v10 = vpop.f32.mrf.mxu2  ;;  %v2478_v11 = vpop.f32.mrf.mxu3 }
 0x20d   : > { %v757_v14 = vmax.f32 %v2476_v10, %v2478_v11 }
 0x20f   : > { %758 = vmax.xlane.f32.xlu2 %v757_v14  ;;  %v711_v30 = vpop.xlane.xlu1 %710 }
 0x214   : > { %v2482_v17 = vpop.f32.mrf.mxu2  ;;  %v2484_v18 = vpop.f32.mrf.mxu3 }
 0x215   : > { %v760_v39 = vmax.f32 %v2482_v17, %v2484_v18 }
 0x217   : > { %761 = vmax.xlane.f32.xlu2 %v760_v39  ;;  %v714_v35 = vpop.xlane.xlu1 %713 }
 0x21c   : > { %v2490_v47 = vpop.f32.mrf.mxu2  ;;  %v2492_v54 = vpop.f32.mrf.mxu3 }
 0x21d   : > { %v763_v62 = vmax.f32 %v2490_v47, %v2492_v54 }
 0x21f   : > { %764 = vmax.xlane.f32.xlu2 %v763_v62  ;;  %v717_v19 = vpop.xlane.xlu1 %716 }
 0x224   : > { %v2498_v14 = vpop.f32.mrf.mxu2  ;;  %v2500_v16 = vpop.f32.mrf.mxu3 }
 0x225   : > { %v766_v15 = vmax.f32 %v2498_v14, %v2500_v16 }
 0x227   : > { %767 = vmax.xlane.f32.xlu2 %v766_v15  ;;  %v720_v50 = vpop.xlane.xlu1 %719 }
 0x22c   : > { %v2504_v39 = vpop.f32.mrf.mxu2  ;;  %v2506_v27 = vpop.f32.mrf.mxu3 }
 0x22d   : > { %3966 = vst [vmem:[#allocation19_spill] sm:$0xff] %v2504_v39  ;;  %v769_v62 = vmax.f32 %v2504_v39, %v2506_v27 }
 0x22e   : > { %3967 = vst [vmem:[#allocation20_spill] sm:$0xff] %v2506_v27  ;;  %v2526_v27 = vpop.f32.mrf.mxu1 }
 0x22f   : > { %722 = vmax.xlane.f32.xlu2 %v721_v38  ;;  %v727_v38 = vmax.f32 %v2518_v21, %v2520_v20  ;;  %3971 = vst [vmem:[#allocation24_spill] sm:$0xff] %v2526_v27  ;;  %v730_v39 = vmax.f32 %v2524_v51, %v2526_v27  ;;  %v799_v27 = vsub.f32 %v2392_v4, %v717_v19 }
 0x230   : > { %v800_v51 = vsub.f32 %v2394_v5, %v717_v19  ;;  %v797_v4 = vsub.f32 %v2384_v0, %v714_v35  ;;  %v796_v0 = vsub.f32 %v2378_v61, %v711_v30 }
 0x232   : > { %v883_v5 = vmul.f32 1.442695, %v797_v4 }
 0x234   : > { %v2512_v43 = vpop.f32.mrf.mxu2  ;;  %v2514_v42 = vpop.f32.mrf.mxu3 }
 0x235   : > { %v772_v15 = vmax.f32 %v2512_v43, %v2514_v42 }
 0x236   : > { %v2532_v24 = vpop.f32.mrf.mxu1 }
 0x237   : > { %770 = vmax.xlane.f32.xlu2 %v769_v62  ;;  %773 = vmax.xlane.f32.xlu1 %v772_v15  ;;  %3972 = vst [vmem:[#allocation25_spill] sm:$0xff] %v2532_v24  ;;  %v801_v62 = vsub.f32 %v2400_v8, %v720_v50  ;;  %v802_v15 = vsub.f32 %v2402_v9, %v720_v50  ;;  %v887_v9 = vmul.f32 1.442695, %v799_v27  ;;  %v889_v50 = vmul.f32 1.442695, %v800_v51 }
 0x239   : > { %v891_v20 = vmul.f32 1.442695, %v801_v62  ;;  %v893_v21 = vmul.f32 1.442695, %v802_v15 }
 0x23b   : > { %1965 = vpow2.f32 %v891_v20  ;;  %v798_v20 = vsub.f32 %v2386_v1, %v714_v35 }
 0x23c   : > { %1967 = vpow2.f32 %v893_v21 }
 0x23d   : > { %1969 = vpow2.f32 %v887_v9  ;;  %v885_v19 = vmul.f32 1.442695, %v798_v20  ;;  %v881_v9 = vmul.f32 1.442695, %v796_v0 }
 0x23e   : > { %1971 = vpow2.f32 %v889_v50 }
 0x23f   : > { %728 = vmax.xlane.f32.xlu2 %v727_v38  ;;  %v733_v38 = vmax.f32 %v2530_v25, %v2532_v24  ;;  %1973 = vpow2.f32 %v883_v5 }
 0x240   : > { %1975 = vpow2.f32 %v885_v19 }
 0x241   : > { %v2546_v24 = vpop.eup %1965 }
 0x242   : > { %v2548_v62 = vpop.eup %1967 }
 0x243   : > { %3973 = vst [vmem:[#allocation26_spill] sm:$0xff] %v2548_v62  ;;  %v1006_v21 = vadd.f32 %v2548_v62, %v2546_v24  ;;  %v2556_v27 = vpop.eup %1969 }
 0x244   : > { %v2558_v51 = vpop.eup %1971 }
 0x245   : > { %3974 = vst [vmem:[#allocation27_spill] sm:$0xff] %v2558_v51  ;;  %v1003_v1 = vadd.f32 %v2558_v51, %v2556_v27  ;;  %v2566_v50 = vpop.eup %1973 }
 0x246   : > { %v2568_v4 = vpop.eup %1975 }
 0x247   : > { %731 = vmax.xlane.f32.xlu2 %v730_v39  ;;  %v2541_v39 = vpop.f32.mrf.mxu0  ;;  %3975 = vst [vmem:[#allocation28_spill] sm:$0xff] %v2568_v4  ;;  %v1000_v61 = vadd.f32 %v2568_v4, %v2566_v50 }
 0x248   : > { %v736_v8 = vmax.f32 %v2541_v39, %v2426_v23 }
 0x24f   : > { %734 = vmax.xlane.f32.xlu2 %v733_v38 }
 0x252   : > { %v2538_v22 = vpop.xlane.xlu2 %740 }
 0x257   : > { %737 = vmax.xlane.f32.xlu2 %v736_v8  ;;  %v795_v8 = vsub.f32 %v2376_v60, %v711_v30  ;;  %v794_v60 = vsub.f32 %v2370_v57, %v2496_v6  ;;  %v792_v57 = vsub.f32 %v2362_v53, %v2486_v31  ;;  %v790_v53 = vsub.f32 %v2354_v49, %v2474_v7 }
 0x258   : > { %v788_v49 = vsub.f32 %v2346_v45, %v2466_v63 }
 0x259   : > { %v879_v35 = vmul.f32 1.442695, %v795_v8  ;;  %v877_v5 = vmul.f32 1.442695, %v794_v60 }
 0x25a   : > { %v2550_v15 = vpop.xlane.xlu2 %743 }
 0x25b   : > { %1977 = vpow2.f32 %v879_v35  ;;  %v873_v35 = vmul.f32 1.442695, %v792_v57 }
 0x25c   : > { %1979 = vpow2.f32 %v881_v9 }
 0x25f   : > { %1007 = vadd.xlane.f32.xlu2 %v1006_v21  ;;  %v793_v21 = vsub.f32 %v2368_v56, %v2496_v6  ;;  %v791_v56 = vsub.f32 %v2360_v52, %v2486_v31  ;;  %v789_v52 = vsub.f32 %v2352_v48, %v2474_v7  ;;  %v787_v48 = vsub.f32 %v2344_v44, %v2466_v63 }
 0x260   : > { %v786_v44 = vsub.f32 %v2338_v41, %v2458_v55 }
 0x261   : > { %v875_v30 = vmul.f32 1.442695, %v793_v21  ;;  %v2578_v19 = vpop.eup %1977 }
 0x262   : > { %v2560_v38 = vpop.xlane.xlu2 %746  ;;  %v2580_v8 = vpop.eup %1979 }
 0x263   : > { %3976 = vst [vmem:[#allocation29_spill] sm:$0xff] %v2580_v8  ;;  %1981 = vpow2.f32 %v875_v30  ;;  %v997_v6 = vadd.f32 %v2580_v8, %v2578_v19  ;;  %v869_v30 = vmul.f32 1.442695, %v790_v53 }
 0x264   : > { %1983 = vpow2.f32 %v877_v5 }
 0x267   : > { %1004 = vadd.xlane.f32.xlu2 %v1003_v1  ;;  %v871_v1 = vmul.f32 1.442695, %v791_v56 }
 0x269   : > { %v2590_v9 = vpop.eup %1981  ;;  %1985 = vpow2.f32 %v871_v1  ;;  %v865_v1 = vmul.f32 1.442695, %v788_v49  ;;  %v783_v49 = vsub.f32 %v2328_v36, %v2448_v46 }
 0x26a   : > { %v2570_v20 = vpop.xlane.xlu2 %749  ;;  %v2592_v21 = vpop.eup %1983  ;;  %1987 = vpow2.f32 %v873_v35 }
 0x26b   : > { %3977 = vst [vmem:[#allocation30_spill] sm:$0xff] %v2592_v21  ;;  %v994_v31 = vadd.f32 %v2592_v21, %v2590_v9 }
 0x26f   : > { %1001 = vadd.xlane.f32.xlu2 %v1000_v61  ;;  %v867_v61 = vmul.f32 1.442695, %v789_v52  ;;  %v2602_v5 = vpop.eup %1985 }
 0x270   : > { %v2604_v56 = vpop.eup %1987 }
 0x271   : > { %3978 = vst [vmem:[#allocation31_spill] sm:$0xff] %v2604_v56  ;;  %1989 = vpow2.f32 %v867_v61  ;;  %v991_v7 = vadd.f32 %v2604_v56, %v2602_v5  ;;  %v861_v61 = vmul.f32 1.442695, %v786_v44 }
 0x272   : > { %v2582_v0 = vpop.xlane.xlu2 %752  ;;  %1991 = vpow2.f32 %v869_v30 }
 0x277   : > { %998 = vadd.xlane.f32.xlu2 %v997_v6  ;;  %v863_v6 = vmul.f32 1.442695, %v787_v48  ;;  %v2614_v35 = vpop.eup %1989 }
 0x278   : > { %v2616_v52 = vpop.eup %1991 }
 0x279   : > { %3979 = vst [vmem:[#allocation32_spill] sm:$0xff] %v2616_v52  ;;  %1993 = vpow2.f32 %v863_v6  ;;  %v988_v45 = vadd.f32 %v2616_v52, %v2614_v35 }
 0x27a   : > { %v2594_v60 = vpop.xlane.xlu2 %755  ;;  %1995 = vpow2.f32 %v865_v1 }
 0x27f   : > { %995 = vadd.xlane.f32.xlu2 %v994_v31  ;;  %v785_v31 = vsub.f32 %v2336_v40, %v2458_v55  ;;  %v2624_v30 = vpop.eup %1993  ;;  %v784_v40 = vsub.f32 %v2330_v37, %v2448_v46  ;;  %v855_v55 = vmul.f32 1.442695, %v783_v49 }
 0x280   : > { %v2626_v48 = vpop.eup %1995 }
 0x281   : > { %v859_v63 = vmul.f32 1.442695, %v785_v31  ;;  %3980 = vst [vmem:[#allocation33_spill] sm:$0xff] %v2626_v48  ;;  %v985_v41 = vadd.f32 %v2626_v48, %v2624_v30  ;;  %v857_v6 = vmul.f32 1.442695, %v784_v40 }
 0x282   : > { %v2606_v57 = vpop.xlane.xlu2 %758 }
 0x283   : > { %1997 = vpow2.f32 %v859_v63 }
 0x284   : > { %1999 = vpow2.f32 %v861_v61 }
 0x285   : > { %2001 = vpow2.f32 %v855_v55 }
 0x286   : > { %2003 = vpow2.f32 %v857_v6 }
 0x287   : > { %992 = vadd.xlane.f32.xlu2 %v991_v7 }
 0x289   : > { %v2634_v1 = vpop.eup %1997 }
 0x28a   : > { %v762_v53 = vpop.xlane.xlu2 %761  ;;  %v2636_v31 = vpop.eup %1999 }
 0x28b   : > { %3981 = vst [vmem:[#allocation34_spill] sm:$0xff] %v2636_v31  ;;  %v982_v61 = vadd.f32 %v2636_v31, %v2634_v1  ;;  %v2644_v40 = vpop.eup %2001 }
 0x28c   : > { %3982 = vst [vmem:[#allocation35_spill] sm:$0xff] %v2644_v40 }
 0x28f   : > { %989 = vadd.xlane.f32.xlu2 %v988_v45 }
 0x292   : > { %v765_v7 = vpop.xlane.xlu2 %764 }
 0x293   : > { %v831_v37 = vsub.f32 %v2490_v47, %v765_v7  ;;  %v832_v49 = vsub.f32 %v2492_v54, %v765_v7  ;;  %v829_v7 = vsub.f32 %v2482_v17, %v762_v53 }
 0x295   : > { %v951_v55 = vmul.f32 1.442695, %v831_v37  ;;  %v830_v37 = vsub.f32 %v2484_v18, %v762_v53 }
 0x297   : > { %986 = vadd.xlane.f32.xlu2 %v985_v41  ;;  %v2646_v41 = vpop.eup %2003 }
 0x298   : > { %3983 = vst [vmem:[#allocation36_spill] sm:$0xff] %v2646_v41 }
 0x29a   : > { %v768_v44 = vpop.xlane.xlu2 %767 }
 0x29b   : > { %v833_v36 = vsub.f32 %v2498_v14, %v768_v44  ;;  %v834_v45 = vsub.f32 %v2500_v16, %v768_v44  ;;  %v2648_v14 = vpop.xlane.xlu1 %725  ;;  %v953_v16 = vmul.f32 1.442695, %v832_v49 }
 0x29d   : > { %v955_v46 = vmul.f32 1.442695, %v833_v36  ;;  %v957_v63 = vmul.f32 1.442695, %v834_v45  ;;  %v979_v36 = vadd.f32 %v2646_v41, %v2644_v40 }
 0x29f   : > { %2005 = vpow2.f32 %v955_v46  ;;  %983 = vadd.xlane.f32.xlu2 %v982_v61  ;;  %v949_v61 = vmul.f32 1.442695, %v830_v37 }
 0x2a0   : > { %2007 = vpow2.f32 %v957_v63 }
 0x2a1   : > { %2009 = vpow2.f32 %v951_v55 }
 0x2a2   : > { %v723_v6 = vpop.xlane.xlu2 %722  ;;  %2011 = vpow2.f32 %v953_v16  ;;  %v827_v16 = vsub.f32 %v2476_v10, %v2606_v57  ;;  %v782_v10 = vsub.f32 %v2322_v33, %v2436_v34  ;;  %v826_v33 = vsub.f32 %v2470_v3, %v2594_v60 }
 0x2a3   : > { %v803_v47 = vsub.f32 %v2408_v12, %v723_v6  ;;  %v804_v44 = vsub.f32 %v2410_v13, %v723_v6  ;;  %v947_v13 = vmul.f32 1.442695, %v829_v7  ;;  %v828_v7 = vsub.f32 %v2478_v11, %v2606_v57 }
 0x2a4   : > { %v943_v37 = vmul.f32 1.442695, %v827_v16 }
 0x2a5   : > { %v2654_v54 = vpop.eup %2005  ;;  %v895_v45 = vmul.f32 1.442695, %v803_v47  ;;  %v897_v46 = vmul.f32 1.442695, %v804_v44 }
 0x2a6   : > { %v2657_v63 = vpop.eup %2007 }
 0x2a7   : > { %3984 = vst [vmem:[#allocation37_spill] sm:$0xff] %v2657_v63  ;;  %2013 = vpow2.f32 %v895_v45  ;;  %980 = vadd.xlane.f32.xlu2 %v979_v36  ;;  %v1054_v12 = vadd.f32 %v2657_v63, %v2654_v54  ;;  %v2664_v55 = vpop.eup %2009 }
 0x2a8   : > { %2015 = vpow2.f32 %v897_v46  ;;  %v2668_v18 = vpop.eup %2011 }
 0x2a9   : > { %1055 = vadd.xlane.f32.xlu1 %v1054_v12  ;;  %3985 = vst [vmem:[#allocation38_spill] sm:$0xff] %v2668_v18  ;;  %2017 = vpow2.f32 %v947_v13  ;;  %v1051_v46 = vadd.f32 %v2668_v18, %v2664_v55  ;;  %v945_v12 = vmul.f32 1.442695, %v828_v7 }
 0x2aa   : > { %v2662_v49 = vpop.xlane.xlu2 %770  ;;  %v774_v17 = vpop.xlane.xlu1 %773  ;;  %2019 = vpow2.f32 %v949_v61  ;;  %v853_v61 = vmul.f32 1.442695, %v782_v10  ;;  %v824_v10 = vsub.f32 %v2462_v59, %v2582_v0 }
 0x2ab   : > { %v837_v6 = vsub.f32 %v2512_v43, %v774_v17  ;;  %v838_v47 = vsub.f32 %v2514_v42, %v774_v17  ;;  %v781_v43 = vsub.f32 %v2320_v32, %v2436_v34  ;;  %v825_v17 = vsub.f32 %v2468_v2, %v2594_v60 }
 0x2ac   : > { %v941_v60 = vmul.f32 1.442695, %v826_v33 }
 0x2ad   : > { %v2670_v53 = vpop.eup %2013  ;;  %v963_v44 = vmul.f32 1.442695, %v837_v6  ;;  %v965_v45 = vmul.f32 1.442695, %v838_v47  ;;  %v851_v32 = vmul.f32 1.442695, %v781_v43  ;;  %v779_v6 = vsub.f32 %v2312_v28, %v2428_v26 }
 0x2ae   : > { %v2674_v36 = vpop.eup %2015  ;;  %v939_v2 = vmul.f32 1.442695, %v825_v17  ;;  %v3994_v17 = vld [vmem:[#allocation6_spill] sm:$0xff] }
 0x2af   : > { %3986 = vst [vmem:[#allocation39_spill] sm:$0xff] %v2674_v36  ;;  %v1009_v42 = vadd.f32 %v2674_v36, %v2670_v53  ;;  %2021 = vpow2.f32 %v963_v44  ;;  %v2688_v57 = vpop.eup %2017  ;;  %v780_v44 = vsub.f32 %v2314_v29, %v2428_v26  ;;  %v847_v28 = vmul.f32 1.442695, %v779_v6 }
 0x2b0   : > { %2023 = vpow2.f32 %v965_v45  ;;  %v2690_v13 = vpop.eup %2019  ;;  %v823_v29 = vsub.f32 %v2460_v58, %v2582_v0 }
 0x2b1   : > { %1010 = vadd.xlane.f32.xlu0 %v1009_v42  ;;  %1052 = vadd.xlane.f32.xlu1 %v1051_v46  ;;  %3987 = vst [vmem:[#allocation40_spill] sm:$0xff] %v2690_v13  ;;  %2025 = vpow2.f32 %v943_v37  ;;  %v1048_v47 = vadd.f32 %v2690_v13, %v2688_v57  ;;  %v849_v42 = vmul.f32 1.442695, %v780_v44  ;;  %v3992_v37 = vld [vmem:[#allocation10_spill] sm:$0xff] }
 0x2b2   : > { %v2686_v11 = vpop.xlane.xlu2 %728  ;;  %2027 = vpow2.f32 %v945_v12  ;;  %v3993_v12 = vld [vmem:[#allocation5_spill] sm:$0xff]  ;;  %v778_v33 = vsub.f32 %v3994_v17, %v3992_v37  ;;  %v935_v6 = vmul.f32 1.442695, %v823_v29 }
 0x2b3   : > { %2029 = vpow2.f32 %v851_v32  ;;  %v777_v32 = vsub.f32 %v3993_v12, %v3992_v37  ;;  %v3999_v37 = vld [vmem:[#allocation18_spill] sm:$0xff]  ;;  %v4000_v12 = vld [vmem:[#allocation9_spill] sm:$0xff] }
 0x2b4   : > { %2031 = vpow2.f32 %v853_v61 }
 0x2b5   : > { %v2696_v34 = vpop.eup %2021  ;;  %2033 = vpow2.f32 %v939_v2  ;;  %v843_v0 = vmul.f32 1.442695, %v777_v32 }
 0x2b6   : > { %v2702_v16 = vpop.eup %2023  ;;  %2035 = vpow2.f32 %v941_v60 }
 0x2b7   : > { %3988 = vst [vmem:[#allocation41_spill] sm:$0xff] %v2702_v16  ;;  %v1060_v3 = vadd.f32 %v2702_v16, %v2696_v34  ;;  %v2710_v45 = vpop.eup %2025  ;;  %2037 = vpow2.f32 %v847_v28  ;;  %v3997_v28 = vld [vmem:[#allocation17_spill] sm:$0xff] }
 0x2b8   : > { %v2712_v43 = vpop.eup %2027  ;;  %2039 = vpow2.f32 %v849_v42  ;;  %v821_v42 = vsub.f32 %v3997_v28, %v2570_v20 }
 0x2b9   : > { %1049 = vadd.xlane.f32.xlu1 %v1048_v47  ;;  %1061 = vadd.xlane.f32.xlu2 %v1060_v3  ;;  %3989 = vst [vmem:[#allocation42_spill] sm:$0xff] %v2712_v43  ;;  %v2714_v46 = vpop.eup %2029  ;;  %v1045_v61 = vadd.f32 %v2712_v43, %v2710_v45  ;;  %v937_v47 = vmul.f32 1.442695, %v824_v10  ;;  %v845_v3 = vmul.f32 1.442695, %v778_v33  ;;  %2041 = vpow2.f32 %v935_v6  ;;  %v4002_v33 = vld [vmem:[#allocation4_spill] sm:$0xff] }
 0x2ba   : > { %v2708_v7 = vpop.xlane.xlu2 %731  ;;  %3990 = vst [vmem:[#allocation43_spill] sm:$0xff] %v2714_v46  ;;  %v2718_v26 = vpop.eup %2031  ;;  %v822_v10 = vsub.f32 %v3999_v37, %v2570_v20 }
 0x2bb   : > { %3991 = vst [vmem:[#allocation44_spill] sm:$0xff] %v2718_v26  ;;  %v976_v58 = vadd.f32 %v2718_v26, %v2714_v46  ;;  %v2732_v59 = vpop.eup %2033  ;;  %2043 = vpow2.f32 %v937_v47  ;;  %v931_v26 = vmul.f32 1.442695, %v821_v42 }
 0x2bc   : > { %v2734_v2 = vpop.eup %2035  ;;  %2045 = vpow2.f32 %v843_v0  ;;  %v933_v28 = vmul.f32 1.442695, %v822_v10 }
 0x2bd   : > { %3995 = vst [vmem:[#allocation10_spill] sm:$0xff] %v2734_v2  ;;  %v2736_v60 = vpop.eup %2037  ;;  %v1042_v32 = vadd.f32 %v2734_v2, %v2732_v59  ;;  %2047 = vpow2.f32 %v845_v3 }
 0x2be   : > { %3996 = vst [vmem:[#allocation5_spill] sm:$0xff] %v2736_v60  ;;  %v2740_v29 = vpop.eup %2039  ;;  %2049 = vpow2.f32 %v931_v26 }
 0x2bf   : > { %3998 = vst [vmem:[#allocation6_spill] sm:$0xff] %v2740_v29  ;;  %v973_v6 = vadd.f32 %v2740_v29, %v2736_v60  ;;  %v2754_v20 = vpop.eup %2041  ;;  %2051 = vpow2.f32 %v933_v28  ;;  %v4010_v28 = vld [vmem:[#allocation13_spill] sm:$0xff] }
 0x2c1   : > { %1046 = vadd.xlane.f32.xlu1 %v1045_v61  ;;  %977 = vadd.xlane.f32.xlu2 %v976_v58  ;;  %v4001_v61 = vld [vmem:[#allocation3_spill] sm:$0xff]  ;;  %v776_v58 = vsub.f32 %v4002_v33, %v4000_v12  ;;  %v2756_v0 = vpop.eup %2043 }
 0x2c2   : > { %v2730_v44 = vpop.xlane.xlu2 %734  ;;  %v775_v17 = vsub.f32 %v4001_v61, %v4000_v12  ;;  %4003 = vst [vmem:[#allocation17_spill] sm:$0xff] %v2756_v0  ;;  %v2758_v61 = vpop.eup %2045  ;;  %v4005_v12 = vld [vmem:[#allocation15_spill] sm:$0xff] }
 0x2c3   : > { %v841_v37 = vmul.f32 1.442695, %v776_v58  ;;  %4004 = vst [vmem:[#allocation18_spill] sm:$0xff] %v2758_v61  ;;  %v819_v3 = vsub.f32 %v4005_v12, %v2560_v38  ;;  %v2762_v42 = vpop.eup %2047 }
 0x2c4   : > { %v839_v47 = vmul.f32 1.442695, %v775_v17  ;;  %4006 = vst [vmem:[#allocation9_spill] sm:$0xff] %v2762_v42  ;;  %v1039_v17 = vadd.f32 %v2756_v0, %v2754_v20  ;;  %v970_v58 = vadd.f32 %v2762_v42, %v2758_v61  ;;  %v2772_v26 = vpop.eup %2049 }
 0x2c5   : > { %v927_v33 = vmul.f32 1.442695, %v819_v3  ;;  %v2774_v12 = vpop.eup %2051  ;;  %v4012_v3 = vld [vmem:[#allocation14_spill] sm:$0xff] }
 0x2c6   : > { %2053 = vpow2.f32 %v839_v47  ;;  %4008 = vst [vmem:[#allocation3_spill] sm:$0xff] %v2774_v12  ;;  %v817_v47 = vsub.f32 %v4010_v28, %v2550_v15  ;;  %v4014_v28 = vld [vmem:[#allocation11_spill] sm:$0xff] }
 0x2c7   : > { %2055 = vpow2.f32 %v841_v37 }
 0x2c8   : > { %2057 = vpow2.f32 %v927_v33 }
 0x2c9   : > { %1043 = vadd.xlane.f32.xlu1 %v1042_v32  ;;  %974 = vadd.xlane.f32.xlu2 %v973_v6  ;;  %v4007_v32 = vld [vmem:[#allocation16_spill] sm:$0xff] }
 0x2ca   : > { %v2752_v41 = vpop.xlane.xlu2 %737  ;;  %v820_v10 = vsub.f32 %v4007_v32, %v2560_v38  ;;  %v818_v32 = vsub.f32 %v4012_v3, %v2550_v15  ;;  %v815_v15 = vsub.f32 %v4014_v28, %v2538_v22  ;;  %v4017_v28 = vld [vmem:[#allocation19_spill] sm:$0xff] }
 0x2cc   : > { %v929_v6 = vmul.f32 1.442695, %v820_v10  ;;  %v2776_v38 = vpop.eup %2053  ;;  %v1036_v10 = vadd.f32 %v2774_v12, %v2772_v26  ;;  %v925_v42 = vmul.f32 1.442695, %v818_v32 }
 0x2cd   : > { %4009 = vst [vmem:[#allocation4_spill] sm:$0xff] %v2776_v38  ;;  %v2780_v37 = vpop.eup %2055 }
 0x2ce   : > { %4011 = vst [vmem:[#allocation15_spill] sm:$0xff] %v2780_v37  ;;  %2059 = vpow2.f32 %v929_v6  ;;  %v2790_v48 = vpop.eup %2057  ;;  %v4015_v6 = vld [vmem:[#allocation12_spill] sm:$0xff] }
 0x2cf   : > { %v816_v3 = vsub.f32 %v4015_v6, %v2538_v22  ;;  %v4018_v22 = vld [vmem:[#allocation20_spill] sm:$0xff] }
 0x2d1   : > { %1040 = vadd.xlane.f32.xlu1 %v1039_v17  ;;  %971 = vadd.xlane.f32.xlu2 %v970_v58  ;;  %v923_v17 = vmul.f32 1.442695, %v817_v47  ;;  %v967_v58 = vadd.f32 %v2780_v37, %v2776_v38  ;;  %v921_v32 = vmul.f32 1.442695, %v816_v3 }
 0x2d2   : > { %v2770_v29 = vpop.xlane.xlu2 %1007 }
 0x2d3   : > { %2061 = vpow2.f32 %v923_v17  ;;  %v835_v17 = vsub.f32 %v4017_v28, %v2662_v49  ;;  %vm1263_vm1 = vweird.f32 %v2770_v29  ;;  %v1267_v36 = vand.u32 2147483647, %v2770_v29 }
 0x2d4   : > { %v2792_v33 = vpop.eup %2059  ;;  %2063 = vpow2.f32 %v925_v42  ;;  %v836_v42 = vsub.f32 %v4018_v22, %v2662_v49 }
 0x2d5   : > { %4013 = vst [vmem:[#allocation16_spill] sm:$0xff] %v2792_v33  ;;  %v1033_v47 = vadd.f32 %v2792_v33, %v2790_v48  ;;  %vm1268_vm10 = vcmp.eq.f32.partialorder %v1267_v36, 8.507059e+37 }
 0x2d6   : > { %v961_v3 = vmul.f32 1.442695, %v836_v42 }
 0x2d9   : > { %1037 = vadd.xlane.f32.xlu1 %v1036_v10  ;;  %968 = vadd.xlane.f32.xlu2 %v967_v58  ;;  %v919_v10 = vmul.f32 1.442695, %v815_v15  ;;  %v2802_v12 = vpop.eup %2061  ;;  %v959_v15 = vmul.f32 1.442695, %v835_v17 }
 0x2da   : > { %v2788_v31 = vpop.xlane.xlu2 %1004  ;;  %v2804_v58 = vpop.eup %2063 }
 0x2db   : > { %4016 = vst [vmem:[#allocation13_spill] sm:$0xff] %v2804_v58  ;;  %2065 = vpow2.f32 %v919_v10  ;;  %v1030_v6 = vadd.f32 %v2804_v58, %v2802_v12  ;;  %v4020_v10 = vld [vmem:[#allocation7_spill] sm:$0xff]  ;;  %vm1248_vm4 = vweird.f32 %v2788_v31 }
 0x2dc   : > { %2067 = vpow2.f32 %v921_v32  ;;  %v805_v0 = vsub.f32 %v4020_v10, %v2648_v14  ;;  %v4021_v32 = vld [vmem:[#allocation8_spill] sm:$0xff]  ;;  %v4023_v10 = vld [vmem:[#allocation23_spill] sm:$0xff] }
 0x2dd   : > { %2069 = vpow2.f32 %v959_v15  ;;  %v806_v28 = vsub.f32 %v4021_v32, %v2648_v14  ;;  %v809_v15 = vsub.f32 %v4023_v10, %v2708_v7  ;;  %v4024_v14 = vld [vmem:[#allocation24_spill] sm:$0xff] }
 0x2de   : > { %2071 = vpow2.f32 %v961_v3  ;;  %v899_v17 = vmul.f32 1.442695, %v805_v0  ;;  %v810_v3 = vsub.f32 %v4024_v14, %v2708_v7 }
 0x2df   : > { %v901_v22 = vmul.f32 1.442695, %v806_v28  ;;  %v907_v0 = vmul.f32 1.442695, %v809_v15 }
 0x2e0   : > { %2073 = vpow2.f32 %v899_v17  ;;  %v909_v28 = vmul.f32 1.442695, %v810_v3  ;;  %v811_v17 = vsub.f32 %v2530_v25, %v2730_v44  ;;  %v813_v25 = vsub.f32 %v2541_v39, %v2752_v41  ;;  %v4032_v39 = vld [vmem:[#allocation22_spill] sm:$0xff] }
 0x2e1   : > { %1034 = vadd.xlane.f32.xlu1 %v1033_v47  ;;  %v2814_v33 = vpop.eup %2065  ;;  %2075 = vpow2.f32 %v901_v22  ;;  %v4026_v22 = vld [vmem:[#allocation25_spill] sm:$0xff] }
 0x2e2   : > { %v2800_v37 = vpop.xlane.xlu2 %1001  ;;  %v2816_v52 = vpop.eup %2067  ;;  %2077 = vpow2.f32 %v907_v0  ;;  %v812_v10 = vsub.f32 %v4026_v22, %v2730_v44  ;;  %v911_v15 = vmul.f32 1.442695, %v811_v17  ;;  %v814_v44 = vsub.f32 %v2426_v23, %v2752_v41 }
 0x2e3   : > { %4019 = vst [vmem:[#allocation14_spill] sm:$0xff] %v2816_v52  ;;  %v1027_v49 = vadd.f32 %v2816_v52, %v2814_v33  ;;  %v2824_v42 = vpop.eup %2069  ;;  %2079 = vpow2.f32 %v909_v28  ;;  %v915_v17 = vmul.f32 1.442695, %v813_v25  ;;  %vm1233_vm15 = vweird.f32 %v2800_v37 }
 0x2e4   : > { %v913_v14 = vmul.f32 1.442695, %v812_v10  ;;  %2081 = vpow2.f32 %v911_v15  ;;  %v917_v22 = vmul.f32 1.442695, %v814_v44  ;;  %v4031_v15 = vld [vmem:[#allocation21_spill] sm:$0xff] }
 0x2e5   : > { %v807_v2 = vsub.f32 %v4031_v15, %v2686_v11 }
 0x2e6   : > { %2083 = vpow2.f32 %v913_v14  ;;  %v808_v14 = vsub.f32 %v4032_v39, %v2686_v11 }
 0x2e7   : > { %2085 = vpow2.f32 %v915_v17  ;;  %v903_v41 = vmul.f32 1.442695, %v807_v2 }
 0x2e8   : > { %2087 = vpow2.f32 %v917_v22  ;;  %v905_v25 = vmul.f32 1.442695, %v808_v14 }
 0x2e9   : > { %1031 = vadd.xlane.f32.xlu1 %v1030_v6  ;;  %v2826_v6 = vpop.eup %2071  ;;  %2089 = vpow2.f32 %v903_v41 }
 0x2ea   : > { %v2812_v47 = vpop.xlane.xlu2 %998  ;;  %4022 = vst [vmem:[#allocation11_spill] sm:$0xff] %v2826_v6  ;;  %v1057_v32 = vadd.f32 %v2826_v6, %v2824_v42  ;;  %2091 = vpow2.f32 %v905_v25 }
 0x2eb   : > { %2093 = vrcp.f32 %v2770_v29 }
 0x2ec   : > { %2095 = vrcp.f32 %v2788_v31 }
 0x2ed   : > { %2097 = vrcp.f32 %v2800_v37 }
 0x2f1   : > { %1028 = vadd.xlane.f32.xlu1 %v1027_v49  ;;  %v2836_v49 = vpop.eup %2073 }
 0x2f2   : > { %v2828_v58 = vpop.xlane.xlu2 %995  ;;  %v2838_v52 = vpop.eup %2075 }
 0x2f3   : > { %4025 = vst [vmem:[#allocation12_spill] sm:$0xff] %v2838_v52  ;;  %v1012_v7 = vadd.f32 %v2838_v52, %v2836_v49  ;;  %v2848_v3 = vpop.eup %2077 }
 0x2f4   : > { %4027 = vst [vmem:[#allocation19_spill] sm:$0xff] %v2848_v3 }
 0x2f9   : > { %1058 = vadd.xlane.f32.xlu1 %v1057_v32  ;;  %v2850_v32 = vpop.eup %2079 }
 0x2fa   : > { %v2844_v56 = vpop.xlane.xlu2 %992  ;;  %4028 = vst [vmem:[#allocation20_spill] sm:$0xff] %v2850_v32  ;;  %v1018_v0 = vadd.f32 %v2850_v32, %v2848_v3  ;;  %v2860_v10 = vpop.eup %2081 }
 0x2fb   : > { %4029 = vst [vmem:[#allocation7_spill] sm:$0xff] %v2860_v10 }
 0x301   : > { %1013 = vadd.xlane.f32.xlu1 %v1012_v7  ;;  %v2862_v7 = vpop.eup %2083 }
 0x302   : > { %v2858_v28 = vpop.xlane.xlu2 %989  ;;  %4030 = vst [vmem:[#allocation8_spill] sm:$0xff] %v2862_v7  ;;  %v1021_v23 = vadd.f32 %v2862_v7, %v2860_v10  ;;  %v2872_v44 = vpop.eup %2085 }
 0x303   : > { %4033 = vst [vmem:[#allocation23_spill] sm:$0xff] %v2872_v44  ;;  %v2874_v32 = vpop.eup %2087 }
 0x304   : > { %4034 = vst [vmem:[#allocation24_spill] sm:$0xff] %v2874_v32  ;;  %v1024_v17 = vadd.f32 %v2874_v32, %v2872_v44  ;;  %v2878_v11 = vpop.eup %2089  ;;  %v1254_v44 = vand.u32 2147483648, %v2788_v31 }
 0x305   : > { %4035 = vst [vmem:[#allocation25_spill] sm:$0xff] %v2878_v11  ;;  %v2880_v22 = vpop.eup %2091 }
 0x306   : > { %4036 = vst [vmem:[#allocation21_spill] sm:$0xff] %v2880_v22  ;;  %v1015_v39 = vadd.f32 %v2880_v22, %v2878_v11  ;;  %v2894_v41 = vpop.eup %2093  ;;  %v1269_v11 = vand.u32 2147483648, %v2770_v29  ;;  %v1255_v36 = vor.u32 1.1754944e-38, %v1254_v44  ;;  %v1222_v44 = vand.u32 2147483647, %v2812_v47 }
 0x307   : > { %vm1264_vm3 = vweird.f32 %v2894_v41 }
 0x308   : > { %vm2946_vm9 = vmor %vm1263_vm1, %vm1264_vm3 }
 0x309   : > { %1019 = vadd.xlane.f32.xlu1 %v1018_v0 }
 0x30a   : > { %v2870_v0 = vpop.xlane.xlu2 %986 }
 0x311   : > { %1022 = vadd.xlane.f32.xlu1 %v1021_v23 }
 0x312   : > { %v2882_v15 = vpop.xlane.xlu2 %983 }
 0x319   : > { %1025 = vadd.xlane.f32.xlu1 %v1024_v17  ;;  %v2898_v17 = vpop.eup %2095 }
 0x31a   : > { %v2891_v23 = vpop.xlane.xlu2 %980  ;;  %v1244_v22 = vmul.f32 %v2898_v17, %v2788_v31  ;;  %v2906_v21 = vpop.eup %2097  ;;  %vm1249_vm5 = vweird.f32 %v2898_v17 }
 0x31b   : > { %vm1250_vm11 = vmor %vm1248_vm4, %vm1249_vm5  ;;  %vm1234_vm13 = vweird.f32 %v2906_v21  ;;  %vm3018_vm4 = vcmp.eq.f32.partialorder %v1222_v44, 8.507059e+37 }
 0x31c   : > { %v2884_v2 = vpop.xlane.xlu1 %1055  ;;  %v1245_v43 = vsub.f32 1.0, %v1244_v22  ;;  %vm2996_vm0 = vmor %vm1233_vm15, %vm1234_vm13 }
 0x31e   : > { %v1246_v63 = vmul.f32 %v2898_v17, %v1245_v43 }
 0x321   : > { %1016 = vadd.xlane.f32.xlu1 %v1015_v39  ;;  %v1259_v39 = vmul.f32 %v2894_v41, %v2770_v29 }
 0x323   : > { %v1260_v32 = vsub.f32 1.0, %v1259_v39  ;;  %v1229_v39 = vmul.f32 %v2906_v21, %v2800_v37 }
 0x324   : > { %v2888_v14 = vpop.xlane.xlu1 %1052  ;;  %v3033_v44 = vpop.xlane.xlu0 %1010 }
 0x325   : > { %v1261_v51 = vmul.f32 %v2894_v41, %v1260_v32 }
 0x327   : > { %v1262_v52 = vadd.f32 %v2894_v41, %v1261_v51 }
 0x32c   : > { %v2896_v25 = vpop.xlane.xlu1 %1049  ;;  %v1062_v7 = vpop.xlane.xlu2 %1061 }
 0x32d   : > { %2099 = vrcp.f32 %v1062_v7  ;;  %v1539_v6 = vand.u32 2147483648, %v1062_v7  ;;  %v1537_v32 = vand.u32 2147483647, %v1062_v7  ;;  %vm1533_vm6 = vweird.f32 %v1062_v7 }
 0x32e   : > { %2101 = vrcp.f32 %v2812_v47 }
 0x32f   : > { %2103 = vrcp.f32 %v2828_v58  ;;  %v1540_v51 = vor.u32 1.1754944e-38, %v1539_v6  ;;  %vm1538_vm8 = vcmp.eq.f32.partialorder %v1537_v32, 8.507059e+37  ;;  %v1266_v6 = vsel %vm2946_vm9, %v2894_v41, %v1262_v52 }
 0x330   : > { %2105 = vrcp.f32 %v2844_v56 }
 0x331   : > { %2107 = vrcp.f32 %v2858_v28 }
 0x332   : > { %2109 = vrcp.f32 %v2870_v0 }
 0x333   : > { %v2100_v13 = vpop.eup %2099  ;;  %2111 = vrcp.f32 %v2882_v15 }
 0x334   : > { %v2908_v8 = vpop.xlane.xlu1 %1046  ;;  %v2911_v4 = vpop.eup %2101  ;;  %v1529_v18 = vmul.f32 %v2100_v13, %v1062_v7  ;;  %vm1534_vm2 = vweird.f32 %v2100_v13  ;;  %2113 = vrcp.f32 %v2884_v2 }
 0x335   : > { %v1214_v62 = vmul.f32 %v2911_v4, %v2812_v47  ;;  %v2924_v43 = vpop.eup %2103  ;;  %vm1535_vm7 = vmor %vm1533_vm6, %vm1534_vm2  ;;  %vm1219_vm14 = vweird.f32 %v2911_v4  ;;  %vm1218_vm2 = vweird.f32 %v2812_v47  ;;  %2115 = vrcp.f32 %v2888_v14 }
 0x336   : > { %v1530_v22 = vsub.f32 1.0, %v1529_v18  ;;  %v1230_v18 = vsub.f32 1.0, %v1229_v39  ;;  %v2933_v61 = vpop.eup %2105  ;;  %v1199_v39 = vmul.f32 %v2924_v43, %v2828_v58  ;;  %vm3014_vm3 = vmor %vm1218_vm2, %vm1219_vm14  ;;  %vm1204_vm5 = vweird.f32 %v2924_v43 }
 0x337   : > { %v1215_v10 = vsub.f32 1.0, %v1214_v62  ;;  %v2938_v60 = vpop.eup %2107  ;;  %v1184_v32 = vmul.f32 %v2933_v61, %v2844_v56  ;;  %vm1203_vm6 = vweird.f32 %v2828_v58  ;;  %2117 = vrcp.f32 %v2891_v23 }
 0x338   : > { %v1531_v16 = vmul.f32 %v2100_v13, %v1530_v22  ;;  %v1247_v22 = vadd.f32 %v2898_v17, %v1246_v63  ;;  %v1252_v63 = vand.u32 2147483647, %v2788_v31  ;;  %v1169_v52 = vmul.f32 %v2938_v60, %v2858_v28  ;;  %vm3051_vm9 = vmor %vm1203_vm6, %vm1204_vm5 }
 0x339   : > { %v1200_v41 = vsub.f32 1.0, %v1199_v39  ;;  %v1185_v39 = vsub.f32 1.0, %v1184_v32  ;;  %2119 = vrcp.f32 %v3033_v44  ;;  %v1192_v32 = vand.u32 2147483647, %v2844_v56 }
 0x33a   : > { %v1532_v3 = vadd.f32 %v2100_v13, %v1531_v16  ;;  %v1251_v7 = vsel %vm1250_vm11, %v2898_v17, %v1247_v22  ;;  %vm1253_vm12 = vcmp.eq.f32.partialorder %v1252_v63, 8.507059e+37  ;;  %v1170_v62 = vsub.f32 1.0, %v1169_v52 }
 0x33b   : > { %v1194_v52 = vand.u32 2147483648, %v2844_v56  ;;  %2121 = vrcp.f32 %v2896_v25  ;;  %vm1158_vm2 = vweird.f32 %v2870_v0  ;;  %vm1143_vm5 = vweird.f32 %v2882_v15 }
 0x33c   : > { %v2930_v38 = vpop.xlane.xlu1 %1043  ;;  %v1536_v46 = vsel %vm1535_vm7, %v2100_v13, %v1532_v3  ;;  %v1231_v13 = vmul.f32 %v2906_v21, %v1230_v18  ;;  %v1270_v3 = vor.u32 1.1754944e-38, %v1269_v11  ;;  %v2971_v18 = vpop.eup %2109  ;;  %v1239_v11 = vand.u32 2147483648, %v2800_v37 }
 0x33d   : > { %v2951_v16 = vsel %vm1538_vm8, %v1540_v51, %v1536_v46  ;;  %v1216_v46 = vmul.f32 %v2911_v4, %v1215_v10  ;;  %v1237_v10 = vand.u32 2147483647, %v2800_v37  ;;  %v1224_v51 = vand.u32 2147483648, %v2812_v47 }
 0x33e   : > { %4039 = vst [vmem:[#allocation22_spill] sm:$0xff] %v2951_v16  ;;  %v1605_v29 = vmul.f32 %v2696_v34, %v2951_v16  ;;  %v2969_v31 = vsel %vm1268_vm10, %v1270_v3, %v1266_v6  ;;  %v2973_v34 = vsel %vm1253_vm12, %v1255_v36, %v1251_v7  ;;  %v1232_v22 = vadd.f32 %v2906_v21, %v1231_v13 }
 0x33f   : > { %4040 = vst [vmem:[#allocation45_spill] sm:$0xff] %v2969_v31  ;;  %v1217_v63 = vadd.f32 %v2911_v4, %v1216_v46  ;;  %v1201_v6 = vmul.f32 %v2924_v43, %v1200_v41  ;;  %v2992_v13 = vmul.f32 %v2546_v24, %v2969_v31  ;;  %vm3000_vm1 = vcmp.eq.f32.partialorder %v1237_v10, 8.507059e+37 }
 0x340   : > { %1635 = vmatpush.msrb.mxu3 %v1605_v29  ;;  %4041 = vst [vmem:[#allocation46_spill] sm:$0xff] %v2973_v34  ;;  %v1154_v29 = vmul.f32 %v2971_v18, %v2870_v0  ;;  %v1240_v46 = vor.u32 1.1754944e-38, %v1239_v11  ;;  %v3007_v37 = vmul.f32 %v2556_v27, %v2973_v34  ;;  %v1236_v24 = vsel %vm2996_vm0, %v2906_v21, %v1232_v22  ;;  %v3031_v22 = vpop.eup %2111 }
 0x341   : > { %v1209_v47 = vand.u32 2147483648, %v2828_v58  ;;  %v1186_v36 = vmul.f32 %v2933_v61, %v1185_v39  ;;  %v1171_v27 = vmul.f32 %v2938_v60, %v1170_v62  ;;  %v1221_v21 = vsel %vm3014_vm3, %v2911_v4, %v1217_v63 }
 0x342   : > { %v1225_v41 = vor.u32 1.1754944e-38, %v1224_v51  ;;  %v1155_v10 = vsub.f32 1.0, %v1154_v29  ;;  %v1202_v11 = vadd.f32 %v2924_v43, %v1201_v6  ;;  %v3038_v39 = vsel %vm3000_vm1, %v1240_v46, %v1236_v24 }
 0x343   : > { %4050 = vst [vmem:[#allocation47_spill] sm:$0xff] %v3038_v39  ;;  %v1207_v4 = vand.u32 2147483647, %v2828_v58  ;;  %v1210_v63 = vor.u32 1.1754944e-38, %v1209_v47  ;;  %vm1188_vm7 = vweird.f32 %v2844_v56  ;;  %vm1189_vm8 = vweird.f32 %v2933_v61 }
 0x344   : > { %v2978_v17 = vpop.xlane.xlu1 %1040  ;;  %v3046_v62 = vsel %vm3018_vm4, %v1225_v41, %v1221_v21  ;;  %v1187_v29 = vadd.f32 %v2933_v61, %v1186_v36  ;;  %v1172_v58 = vadd.f32 %v2938_v60, %v1171_v27  ;;  %vm1174_vm10 = vweird.f32 %v2938_v60  ;;  %vm3065_vm11 = vmor %vm1188_vm7, %vm1189_vm8  ;;  %v3073_v36 = vpop.eup %2113 }
 0x345   : > { %4051 = vst [vmem:[#allocation48_spill] sm:$0xff] %v3046_v62  ;;  %v1156_v3 = vmul.f32 %v2971_v18, %v1155_v10  ;;  %v1139_v7 = vmul.f32 %v3031_v22, %v2882_v15  ;;  %v1206_v46 = vsel %vm3051_vm9, %v2924_v43, %v1202_v11  ;;  %vm1173_vm12 = vweird.f32 %v2858_v28  ;;  %v3088_v41 = vpop.eup %2115 }
 0x346   : > { %v1179_v47 = vand.u32 2147483648, %v2858_v28  ;;  %v3077_v27 = vmul.f32 %v2566_v50, %v3038_v39  ;;  %v3081_v43 = vmul.f32 %v2578_v19, %v3046_v62  ;;  %vm1208_vm13 = vcmp.eq.f32.partialorder %v1207_v4, 8.507059e+37  ;;  %vm3083_vm14 = vmor %vm1173_vm12, %vm1174_vm10 }
 0x347   : > { %v1177_v56 = vand.u32 2147483647, %v2858_v28  ;;  %v3090_v10 = vsel %vm1208_vm13, %v1210_v63, %v1206_v46  ;;  %v1191_v50 = vsel %vm3065_vm11, %v2933_v61, %v1187_v29  ;;  %v1176_v19 = vsel %vm3083_vm14, %v2938_v60, %v1172_v58  ;;  %v3102_v28 = vpop.eup %2117 }
 0x348   : > { %4058 = vst [vmem:[#allocation49_spill] sm:$0xff] %v3090_v10  ;;  %v1164_v11 = vand.u32 2147483648, %v2870_v0  ;;  %v1140_v4 = vsub.f32 1.0, %v1139_v7  ;;  %v1157_v6 = vadd.f32 %v2971_v18, %v1156_v3  ;;  %vm1159_vm15 = vweird.f32 %v2971_v18  ;;  %v3106_v46 = vpop.eup %2119 }
 0x349   : > { %v1499_v63 = vmul.f32 %v3073_v36, %v2884_v2  ;;  %vm1193_vm0 = vcmp.eq.f32.partialorder %v1192_v32, 8.507059e+37  ;;  %v1195_v61 = vor.u32 1.1754944e-38, %v1194_v52  ;;  %v1180_v29 = vor.u32 1.1754944e-38, %v1179_v47  ;;  %vm3124_vm3 = vmor %vm1158_vm2, %vm1159_vm15 }
 0x34a   : > { %v1484_v60 = vmul.f32 %v3088_v41, %v2888_v14  ;;  %vm1178_vm1 = vcmp.eq.f32.partialorder %v1177_v56, 8.507059e+37  ;;  %v1162_v3 = vand.u32 2147483647, %v2870_v0  ;;  %v3116_v7 = vmul.f32 %v2590_v9, %v3090_v10 }
 0x34b   : > { %v3118_v24 = vsel %vm1193_vm0, %v1195_v61, %v1191_v50  ;;  %v3120_v32 = vsel %vm1178_vm1, %v1180_v29, %v1176_v19  ;;  %v1165_v47 = vor.u32 1.1754944e-38, %v1164_v11  ;;  %v1141_v21 = vmul.f32 %v3031_v22, %v1140_v4  ;;  %v3139_v11 = vpop.eup %2121 }
 0x34c   : > { %v3042_v51 = vpop.xlane.xlu1 %1037  ;;  %4059 = vst [vmem:[#allocation50_spill] sm:$0xff] %v3116_v7  ;;  %v1124_v0 = vmul.f32 %v3102_v28, %v2891_v23  ;;  %v1161_v9 = vsel %vm3124_vm3, %v2971_v18, %v1157_v6  ;;  %v1147_v56 = vand.u32 2147483647, %v2882_v15  ;;  %v1500_v50 = vsub.f32 1.0, %v1499_v63 }
 0x34d   : > { %4060 = vst [vmem:[#allocation51_spill] sm:$0xff] %v3118_v24  ;;  %v1274_v19 = vmul.f32 %v3106_v46, %v3033_v44  ;;  %2123 = vrcp.f32 %v2908_v8  ;;  %v1149_v61 = vand.u32 2147483648, %v2882_v15  ;;  %v1485_v4 = vsub.f32 1.0, %v1484_v60 }
 0x34e   : > { %4061 = vst [vmem:[#allocation52_spill] sm:$0xff] %v3120_v32  ;;  %v3143_v29 = vmul.f32 %v2602_v5, %v3118_v24  ;;  %vm1163_vm4 = vcmp.eq.f32.partialorder %v1162_v3, 8.507059e+37  ;;  %v1507_v18 = vand.u32 2147483647, %v2884_v2  ;;  %v3149_v6 = vmul.f32 %v2614_v35, %v3120_v32  ;;  %v3163_v32 = vpop.xlane.xlu2 %977 }
 0x34f   : > { %v3151_v63 = vsel %vm1163_vm4, %v1165_v47, %v1161_v9  ;;  %v1134_v52 = vand.u32 2147483648, %v2891_v23  ;;  %v1125_v10 = vsub.f32 1.0, %v1124_v0  ;;  %v1142_v60 = vadd.f32 %v3031_v22, %v1141_v21 }
 0x350   : > { %4064 = vst [vmem:[#allocation53_spill] sm:$0xff] %v3143_v29  ;;  %vm1144_vm6 = vweird.f32 %v3031_v22  ;;  %vm3156_vm7 = vcmp.eq.f32.partialorder %v1147_v56, 8.507059e+37  ;;  %v1501_v3 = vmul.f32 %v3073_v36, %v1500_v50  ;;  %v1275_v24 = vsub.f32 1.0, %v1274_v19 }
 0x351   : > { %4065 = vst [vmem:[#allocation54_spill] sm:$0xff] %v3149_v6  ;;  %v1469_v35 = vmul.f32 %v3139_v11, %v2896_v25  ;;  %v1150_v47 = vor.u32 1.1754944e-38, %v1149_v61  ;;  %v1486_v9 = vmul.f32 %v3088_v41, %v1485_v4  ;;  %v3170_v21 = vmul.f32 %v2624_v30, %v3151_v63  ;;  %vm3186_vm11 = vmor %vm1143_vm5, %vm1144_vm6 }
 0x352   : > { %4066 = vst [vmem:[#allocation55_spill] sm:$0xff] %v3151_v63  ;;  %vm1128_vm8 = vweird.f32 %v2891_v23  ;;  %v1132_v56 = vand.u32 2147483647, %v2891_v23  ;;  %vm1503_vm9 = vweird.f32 %v2884_v2  ;;  %vm3177_vm10 = vcmp.eq.f32.partialorder %v1507_v18, 8.507059e+37 }
 0x353   : > { %4069 = vst [vmem:[#allocation56_spill] sm:$0xff] %v3170_v21  ;;  %v3174_v50 = vpop.eup %2123  ;;  %v1509_v61 = vand.u32 2147483648, %v2884_v2  ;;  %v1135_v4 = vor.u32 1.1754944e-38, %v1134_v52  ;;  %v1126_v63 = vmul.f32 %v3102_v28, %v1125_v10  ;;  %2125 = vrcp.f32 %v3163_v32 }
 0x354   : > { %v3110_v58 = vpop.xlane.xlu1 %1034  ;;  %vm1504_vm12 = vweird.f32 %v3073_v36  ;;  %v1146_v18 = vsel %vm3186_vm11, %v3031_v22, %v1142_v60  ;;  %v1276_v62 = vmul.f32 %v3106_v46, %v1275_v24  ;;  %v1470_v39 = vsub.f32 1.0, %v1469_v35 }
 0x355   : > { %2127 = vrcp.f32 %v2930_v38  ;;  %v1502_v15 = vadd.f32 %v3073_v36, %v1501_v3  ;;  %v1284_v34 = vand.u32 2147483648, %v3033_v44  ;;  %v1454_v10 = vmul.f32 %v3174_v50, %v2908_v8  ;;  %vm3215_vm15 = vmor %vm1503_vm9, %vm1504_vm12 }
 0x356   : > { %v1487_v52 = vadd.f32 %v3088_v41, %v1486_v9  ;;  %vm1489_vm13 = vweird.f32 %v3088_v41  ;;  %vm3204_vm14 = vcmp.eq.f32.partialorder %v1132_v56, 8.507059e+37  ;;  %v1510_v22 = vor.u32 1.1754944e-38, %v1509_v61 }
 0x357   : > { %v1492_v24 = vand.u32 2147483647, %v2888_v14  ;;  %v1494_v60 = vand.u32 2147483648, %v2888_v14  ;;  %v1282_v3 = vand.u32 2147483647, %v3033_v44  ;;  %vm1488_vm0 = vweird.f32 %v2888_v14 }
 0x358   : > { %v3222_v9 = vsel %vm3156_vm7, %v1150_v47, %v1146_v18  ;;  %v1127_v56 = vadd.f32 %v3102_v28, %v1126_v63  ;;  %vm1129_vm1 = vweird.f32 %v3102_v28  ;;  %vm1279_vm2 = vweird.f32 %v3106_v46  ;;  %vm3231_vm3 = vmor %vm1488_vm0, %vm1489_vm13 }
 0x359   : > { %v1471_v61 = vmul.f32 %v3139_v11, %v1470_v39  ;;  %v1506_v2 = vsel %vm3215_vm15, %v3073_v36, %v1502_v15  ;;  %v1277_v14 = vadd.f32 %v3106_v46, %v1276_v62  ;;  %v3236_v5 = vpop.eup %2125  ;;  %vm1278_vm4 = vweird.f32 %v3033_v44  ;;  %v3246_v36 = vpop.xlane.xlu2 %974  ;;  %vm3257_vm7 = vmor %vm1128_vm8, %vm1129_vm1 }
 0x35a   : > { %v1285_v63 = vor.u32 1.1754944e-38, %v1284_v34  ;;  %v1455_v47 = vsub.f32 1.0, %v1454_v10  ;;  %v1491_v39 = vsel %vm3231_vm3, %v3088_v41, %v1487_v52  ;;  %2129 = vrcp.f32 %v2978_v17  ;;  %vm3263_vm9 = vmor %vm1278_vm4, %vm1279_vm2 }
 0x35b   : > { %v3244_v35 = vpop.eup %2127  ;;  %vm1493_vm5 = vcmp.eq.f32.partialorder %v1492_v24, 8.507059e+37  ;;  %v1495_v62 = vor.u32 1.1754944e-38, %v1494_v60  ;;  %vm3249_vm6 = vcmp.eq.f32.partialorder %v1282_v3, 8.507059e+37  ;;  %v3269_v41 = vsel %vm3177_vm10, %v1510_v22, %v1506_v2 }
 0x35c   : > { %v3166_v0 = vpop.xlane.xlu1 %1031  ;;  %4086 = vst [vmem:[#allocation57_spill] sm:$0xff] %v3269_v41  ;;  %v1477_v10 = vand.u32 2147483647, %v2896_v25  ;;  %v1479_v52 = vand.u32 2147483648, %v2896_v25  ;;  %v1131_v23 = vsel %vm3257_vm7, %v3102_v28, %v1127_v56  ;;  %v1472_v60 = vadd.f32 %v3139_v11, %v1471_v61 }
 0x35d   : > { %v3276_v24 = vsel %vm1493_vm5, %v1495_v62, %v1491_v39  ;;  %vm1474_vm8 = vweird.f32 %v3139_v11  ;;  %v1281_v19 = vsel %vm3263_vm9, %v3106_v46, %v1277_v14  ;;  %v1456_v22 = vmul.f32 %v3174_v50, %v1455_v47 }
 0x35e   : > { %4087 = vst [vmem:[#allocation58_spill] sm:$0xff] %v3276_v24  ;;  %v1109_v3 = vmul.f32 %v3236_v5, %v3163_v32  ;;  %v1439_v2 = vmul.f32 %v3244_v35, %v2930_v38  ;;  %2131 = vrcp.f32 %v3246_v36  ;;  %v3291_v28 = vmul.f32 %v2654_v54, %v3269_v41 }
 0x35f   : > { %vm1473_vm10 = vweird.f32 %v2896_v25  ;;  %v1462_v56 = vand.u32 2147483647, %v2908_v8  ;;  %v3297_v46 = vsel %vm3204_vm14, %v1135_v4, %v1131_v23  ;;  %2133 = vrcp.f32 %v3042_v51 }
 0x360   : > { %4088 = vst [vmem:[#allocation59_spill] sm:$0xff] %v3297_v46  ;;  %vm3300_vm11 = vmor %vm1473_vm10, %vm1474_vm8  ;;  %vm3304_vm12 = vcmp.eq.f32.partialorder %v1477_v10, 8.507059e+37  ;;  %v1480_v54 = vor.u32 1.1754944e-38, %v1479_v52  ;;  %v3310_v25 = vsel %vm3249_vm6, %v1285_v63, %v1281_v19  ;;  %v3312_v14 = vpop.eup %2129  ;;  %v3316_v31 = vmul.f32 %v2664_v55, %v3276_v24 }
 0x361   : > { %4093 = vst [vmem:[#allocation60_spill] sm:$0xff] %v3310_v25  ;;  %v1476_v4 = vsel %vm3300_vm11, %v3139_v11, %v1472_v60  ;;  %vm1458_vm13 = vweird.f32 %v2908_v8  ;;  %v1464_v47 = vand.u32 2147483648, %v2908_v8  ;;  %v1110_v39 = vsub.f32 1.0, %v1109_v3 }
 0x362   : > { %v1440_v62 = vsub.f32 1.0, %v1439_v2  ;;  %v1457_v63 = vadd.f32 %v3174_v50, %v1456_v22  ;;  %vm1459_vm14 = vweird.f32 %v3174_v50  ;;  %vm3328_vm15 = vcmp.eq.f32.partialorder %v1462_v56, 8.507059e+37 }
 0x363   : > { %v3334_v11 = vmul.f32 %v2670_v53, %v3310_v25  ;;  %v1119_v15 = vand.u32 2147483648, %v3163_v32  ;;  %v1424_v10 = vmul.f32 %v3312_v14, %v2978_v17  ;;  %v3344_v52 = vsel %vm3304_vm12, %v1480_v54, %v1476_v4  ;;  %vm3349_vm0 = vmor %vm1458_vm13, %vm1459_vm14  ;;  %v3389_v53 = vpop.xlane.xlu2 %971 }
 0x364   : > { %v3239_v18 = vpop.xlane.xlu1 %1028  ;;  %v3337_v44 = vpop.eup %2131  ;;  %4096 = vst [vmem:[#allocation61_spill] sm:$0xff] %v3344_v52  ;;  %v1447_v23 = vand.u32 2147483647, %v2930_v38  ;;  %v1465_v60 = vor.u32 1.1754944e-38, %v1464_v47  ;;  %v1449_v19 = vand.u32 2147483648, %v2930_v38  ;;  %vm1113_vm1 = vweird.f32 %v3163_v32 }
 0x365   : > { %v3356_v3 = vpop.eup %2133  ;;  %v1111_v2 = vmul.f32 %v3236_v5, %v1110_v39  ;;  %v1441_v56 = vmul.f32 %v3244_v35, %v1440_v62  ;;  %v1461_v8 = vsel %vm3349_vm0, %v3174_v50, %v1457_v63  ;;  %vm1443_vm2 = vweird.f32 %v2930_v38 }
 0x366   : > { %v1094_v61 = vmul.f32 %v3337_v44, %v3246_v36  ;;  %v3369_v30 = vmul.f32 %v2688_v57, %v3344_v52  ;;  %vm1114_vm3 = vweird.f32 %v3236_v5  ;;  %v1425_v54 = vsub.f32 1.0, %v1424_v10 }
 0x367   : > { %vm3372_vm4 = vcmp.eq.f32.partialorder %v1447_v23, 8.507059e+37  ;;  %v3376_v47 = vor.u32 1.1754944e-38, %v1119_v15  ;;  %v1409_v63 = vmul.f32 %v3356_v3, %v3042_v51  ;;  %v3385_v57 = vsel %vm3328_vm15, %v1465_v60, %v1461_v8  ;;  %vm3430_vm8 = vmor %vm1113_vm1, %vm1114_vm3 }
 0x368   : > { %4101 = vst [vmem:[#allocation62_spill] sm:$0xff] %v3385_v57  ;;  %v1450_v10 = vor.u32 1.1754944e-38, %v1449_v19  ;;  %v1442_v39 = vadd.f32 %v3244_v35, %v1441_v56  ;;  %vm1444_vm5 = vweird.f32 %v3244_v35  ;;  %v3397_v22 = vadd.f32 %v3236_v5, %v1111_v2 }
 0x369   : > { %v1095_v52 = vsub.f32 1.0, %v1094_v61  ;;  %v1432_v55 = vand.u32 2147483647, %v2978_v17  ;;  %v1434_v60 = vand.u32 2147483648, %v2978_v17  ;;  %v1426_v19 = vmul.f32 %v3312_v14, %v1425_v54  ;;  %vm3418_vm7 = vmor %vm1443_vm2, %vm1444_vm5 }
 0x36a   : > { %v3405_v24 = vmul.f32 %v2710_v45, %v3385_v57  ;;  %vm1428_vm6 = vweird.f32 %v2978_v17  ;;  %v1410_v2 = vsub.f32 1.0, %v1409_v63  ;;  %v1446_v63 = vsel %vm3418_vm7, %v3244_v35, %v1442_v39 }
 0x36b   : > { %v3437_v25 = vmul.f32 %v3337_v44, %v1095_v52  ;;  %vm1429_vm10 = vweird.f32 %v3312_v14  ;;  %vm3440_vm11 = vcmp.eq.f32.partialorder %v1432_v55, 8.507059e+37  ;;  %v1435_v35 = vor.u32 1.1754944e-38, %v1434_v60 }
 0x36c   : > { %v3323_v34 = vpop.xlane.xlu1 %1058  ;;  %v1427_v52 = vadd.f32 %v3312_v14, %v1426_v19  ;;  %v1411_v55 = vmul.f32 %v3356_v3, %v1410_v2  ;;  %v3456_v29 = vsel %vm3372_vm4, %v1450_v10, %v1446_v63  ;;  %vm3471_vm15 = vmor %vm1428_vm6, %vm1429_vm10  ;;  %vm1413_vm0 = vweird.f32 %v3042_v51 }
 0x36d   : > { %2135 = vrcp.f32 %v3323_v34  ;;  %v1524_v41 = vand.u32 2147483648, %v3323_v34  ;;  %vm1518_vm12 = vweird.f32 %v3323_v34  ;;  %v1417_v4 = vand.u32 2147483647, %v3042_v51 }
 0x36e   : > { %2137 = vrcp.f32 %v3110_v58  ;;  %v1419_v10 = vand.u32 2147483648, %v3042_v51  ;;  %v1431_v17 = vsel %vm3471_vm15, %v3312_v14, %v1427_v52  ;;  %vm1414_vm1 = vweird.f32 %v3356_v3 }
 0x36f   : > { %2139 = vrcp.f32 %v3166_v0  ;;  %v1525_v60 = vor.u32 1.1754944e-38, %v1524_v41  ;;  %vm3495_vm3 = vcmp.eq.f32.partialorder %v1417_v4, 8.507059e+37  ;;  %vm3510_vm5 = vmor %vm1413_vm0, %vm1414_vm1  ;;  %vm1099_vm6 = vweird.f32 %v3337_v44 }
 0x370   : > { %2141 = vrcp.f32 %v3239_v18  ;;  %v1420_v14 = vor.u32 1.1754944e-38, %v1419_v10  ;;  %v1593_v10 = vmul.f32 %v2732_v59, %v3456_v29  ;;  %vm1383_vm15 = vweird.f32 %v3166_v0 }
 0x371   : > { %v1087_v57 = vand.u32 2147483647, %v3389_v53 }
 0x373   : > { %v2136_v62 = vpop.eup %2135 }
 0x374   : > { %v3387_v23 = vpop.eup %2137  ;;  %v1514_v15 = vmul.f32 %v2136_v62, %v3323_v34  ;;  %v3392_v50 = vpop.xlane.xlu1 %1013  ;;  %vm1519_vm9 = vweird.f32 %v2136_v62 }
 0x375   : > { %2143 = vrcp.f32 %v3392_v50  ;;  %v3408_v56 = vpop.eup %2139  ;;  %v1394_v61 = vmul.f32 %v3387_v23, %v3110_v58  ;;  %vm1520_vm13 = vmor %vm1518_vm12, %vm1519_vm9  ;;  %vm1293_vm4 = vweird.f32 %v3392_v50  ;;  %vm1399_vm9 = vweird.f32 %v3387_v23 }
 0x376   : > { %v1515_v8 = vsub.f32 1.0, %v1514_v15  ;;  %2145 = vrcp.f32 %v3389_v53  ;;  %v1522_v15 = vand.u32 2147483647, %v3323_v34  ;;  %v3434_v38 = vpop.eup %2141  ;;  %v1379_v54 = vmul.f32 %v3408_v56, %v3166_v0 }
 0x377   : > { %v1395_v6 = vsub.f32 1.0, %v1394_v61  ;;  %v1364_v39 = vmul.f32 %v3434_v38, %v3239_v18  ;;  %vm1398_vm12 = vweird.f32 %v3110_v58  ;;  %vm1369_vm0 = vweird.f32 %v3434_v38 }
 0x378   : > { %v1516_v45 = vmul.f32 %v2136_v62, %v1515_v8  ;;  %vm1523_vm14 = vcmp.eq.f32.partialorder %v1522_v15, 8.507059e+37 }
 0x379   : > { %v1396_v63 = vmul.f32 %v3387_v23, %v1395_v6  ;;  %v1365_v40 = vsub.f32 1.0, %v1364_v39 }
 0x37a   : > { %v1517_v16 = vadd.f32 %v2136_v62, %v1516_v45 }
 0x37b   : > { %v2144_v21 = vpop.eup %2143 }
 0x37c   : > { %v1289_v45 = vmul.f32 %v2144_v21, %v3392_v50  ;;  %v3461_v7 = vpop.xlane.xlu1 %1019  ;;  %v1521_v34 = vsel %vm1520_vm13, %v2136_v62, %v1517_v16  ;;  %v3463_v19 = vpop.eup %2145  ;;  %v1380_v62 = vsub.f32 1.0, %v1379_v54  ;;  %vm1294_vm2 = vweird.f32 %v2144_v21 }
 0x37d   : > { %v3465_v2 = vsel %vm1523_vm14, %v1525_v60, %v1521_v34  ;;  %v3478_v16 = vpop.xlane.xlu2 %968  ;;  %v1299_v60 = vand.u32 2147483648, %v3392_v50  ;;  %v1412_v34 = vadd.f32 %v3356_v3, %v1411_v55  ;;  %v1297_v54 = vand.u32 2147483647, %v3392_v50  ;;  %vm1295_vm7 = vmor %vm1293_vm4, %vm1294_vm2 }
 0x37e   : > { %v1290_v61 = vsub.f32 1.0, %v1289_v45  ;;  %v1603_v15 = vmul.f32 %v2824_v42, %v3465_v2  ;;  %v3492_v42 = vmul.f32 %v3463_v19, %v3389_v53  ;;  %2147 = vrcp.f32 %v3478_v16  ;;  %vm3547_vm14 = vmor %vm1398_vm12, %vm1399_vm9 }
 0x37f   : > { %v1381_v52 = vmul.f32 %v3408_v56, %v1380_v62  ;;  %v3504_v55 = vsel %vm3440_vm11, %v1435_v35, %v1431_v17  ;;  %2149 = vrcp.f32 %v3461_v7  ;;  %v1366_v50 = vmul.f32 %v3434_v38, %v1365_v40 }
 0x380   : > { %v1291_v46 = vmul.f32 %v2144_v21, %v1290_v61  ;;  %1636 = vmatpush.msrb.mxu3 %v1603_v15  ;;  %vm1298_vm10 = vcmp.eq.f32.partialorder %v1297_v54, 8.507059e+37  ;;  %v1397_v35 = vadd.f32 %v3387_v23, %v1396_v63  ;;  %vm1098_vm11 = vweird.f32 %v3246_v36 }
 0x381   : > { %vm1384_vm13 = vweird.f32 %v3408_v56  ;;  %v1367_v61 = vadd.f32 %v3434_v38, %v1366_v50  ;;  %v1591_v17 = vmul.f32 %v2754_v20, %v3504_v55  ;;  %v1080_v54 = vsub.f32 1.0, %v3492_v42 }
 0x382   : > { %1637 = vmatpush.msrb.mxu3 %v3291_v28  ;;  %v1292_v39 = vadd.f32 %v2144_v21, %v1291_v46  ;;  %v1300_v28 = vor.u32 1.1754944e-38, %v1299_v60  ;;  %v1416_v46 = vsel %vm3510_vm5, %v3356_v3, %v1412_v34  ;;  %v1404_v3 = vand.u32 2147483648, %v3110_v58  ;;  %vm3566_vm1 = vmor %vm1383_vm15, %vm1384_vm13 }
 0x383   : > { %v3543_v62 = vsel %vm3495_vm3, %v1420_v14, %v1416_v46  ;;  %v1401_v59 = vsel %vm3547_vm14, %v3387_v23, %v1397_v35  ;;  %v1374_v23 = vand.u32 2147483648, %v3239_v18  ;;  %vm1368_vm3 = vweird.f32 %v3239_v18 }
 0x384   : > { %v3521_v8 = vpop.xlane.xlu1 %1022  ;;  %1638 = vmatpush.msrb.mxu3 %v3316_v31  ;;  %v1296_v51 = vsel %vm1295_vm7, %v2144_v21, %v1292_v39  ;;  %v1402_v21 = vand.u32 2147483647, %v3110_v58  ;;  %v1382_v31 = vadd.f32 %v3408_v56, %v1381_v52  ;;  %v3537_v4 = vpop.eup %2147  ;;  %v1387_v58 = vand.u32 2147483647, %v3166_v0  ;;  %vm3588_vm4 = vmor %vm1368_vm3, %vm1369_vm0 }
 0x385   : > { %2151 = vrcp.f32 %v3521_v8  ;;  %v3527_v41 = vsel %vm1298_vm10, %v1300_v28, %v1296_v51  ;;  %v3560_v15 = vpop.eup %2149  ;;  %v1405_v63 = vor.u32 1.1754944e-38, %v1404_v3  ;;  %v1372_v60 = vand.u32 2147483647, %v3239_v18  ;;  %vm3611_vm7 = vmor %vm1098_vm11, %vm1099_vm6 }
 0x386   : > { %1639 = vmatpush.msrb.mxu3 %v3369_v30  ;;  %v1573_v40 = vmul.f32 %v2836_v49, %v3527_v41  ;;  %v1389_v49 = vand.u32 2147483648, %v3166_v0  ;;  %v1097_v0 = vadd.f32 %v3337_v44, %v3437_v25  ;;  %vm1403_vm2 = vcmp.eq.f32.partialorder %v1402_v21, 8.507059e+37 }
 0x387   : > { %v1386_v20 = vsel %vm3566_vm1, %v3408_v56, %v1382_v31  ;;  %v1589_v6 = vmul.f32 %v2772_v26, %v3543_v62  ;;  %v3584_v25 = vsel %vm1403_vm2, %v1405_v63, %v1401_v59  ;;  %v1319_v56 = vmul.f32 %v3560_v15, %v3461_v7  ;;  %v4129_v63 = vld [vmem:[#allocation50_spill] sm:$0xff] }
 0x388   : > { %1615 = vmatpush.msrb.mxu2 %v1573_v40  ;;  %1640 = vmatpush.msrb.mxu3 %v3405_v24  ;;  %vm1388_vm5 = vcmp.eq.f32.partialorder %v1387_v58, 8.507059e+37  ;;  %v1371_v26 = vsel %vm3588_vm4, %v3434_v38, %v1367_v61  ;;  %v1064_v42 = vmul.f32 %v3537_v4, %v3478_v16  ;;  %v1375_v45 = vor.u32 1.1754944e-38, %v1374_v23  ;;  %v4130_v24 = vld [vmem:[#allocation5_spill] sm:$0xff] }
 0x389   : > { %v1587_v38 = vmul.f32 %v2790_v48, %v3584_v25  ;;  %vm1373_vm9 = vcmp.eq.f32.partialorder %v1372_v60, 8.507059e+37  ;;  %v1101_v46 = vsel %vm3611_vm7, %v3337_v44, %v1097_v0  ;;  %v1074_v50 = vand.u32 2147483648, %v3478_v16 }
 0x38a   : > { %1616 = vmatpush.msrb.mxu2 %v3334_v11  ;;  %1641 = vmatpush.msrb.mxu3 %v1593_v10  ;;  %v1390_v11 = vor.u32 1.1754944e-38, %v1389_v49  ;;  %v3622_v51 = vsel %vm1373_vm9, %v1375_v45, %v1371_v26  ;;  %v4122_v35 = vand.u32 2147483647, %v3163_v32  ;;  %v4123_v3 = vand.u32 2147483648, %v3246_v36  ;;  %v4134_v45 = vld [vmem:[#allocation54_spill] sm:$0xff] }
 0x38b   : > { %v3579_v34 = vpop.eup %2151  ;;  %v4124_v44 = vsel %vm3430_vm8, %v3236_v5, %v3397_v22  ;;  %v4125_v32 = vand.u32 2147483647, %v3246_v36  ;;  %v1081_v31 = vmul.f32 %v3463_v19, %v1080_v54  ;;  %v1065_v10 = vsub.f32 1.0, %v1064_v42  ;;  %v4126_v22 = vld [vmem:[#allocation59_spill] sm:$0xff] }
 0x38c   : > { %v1334_v18 = vmul.f32 %v3579_v34, %v3521_v8  ;;  %v3596_v52 = vpop.xlane.xlu1 %1025  ;;  %1617 = vmatpush.msrb.mxu2 %v2992_v13  ;;  %1642 = vmatpush.msrb.mxu3 %v1591_v17  ;;  %v3605_v39 = vsel %vm1388_vm5, %v1390_v11, %v1386_v20  ;;  %vm1118_vm6 = vcmp.eq.f32.partialorder %v4122_v35, 8.507059e+37  ;;  %v1105_v40 = vor.u32 1.1754944e-38, %v4123_v3  ;;  %v4139_v35 = vld [vmem:[#allocation56_spill] sm:$0xff] }
 0x38d   : > { %2153 = vrcp.f32 %v3596_v52  ;;  %v1585_v48 = vmul.f32 %v2802_v12, %v3605_v39  ;;  %v3637_v21 = vsel %vm1118_vm6, %v3376_v47, %v4124_v44  ;;  %vm1103_vm10 = vcmp.eq.f32.partialorder %v4125_v32, 8.507059e+37  ;;  %v4127_v47 = vld [vmem:[#allocation35_spill] sm:$0xff] }
 0x38e   : > { %v1335_v28 = vsub.f32 1.0, %v1334_v18  ;;  %1618 = vmatpush.msrb.mxu2 %v3007_v37  ;;  %1643 = vmatpush.msrb.mxu3 %v1589_v6  ;;  %v1320_v37 = vsub.f32 1.0, %v1319_v56  ;;  %v3644_v30 = vsel %vm1103_vm10, %v1105_v40, %v1101_v46  ;;  %v1583_v5 = vmul.f32 %v2814_v33, %v3622_v51  ;;  %v4131_v6 = vld [vmem:[#allocation53_spill] sm:$0xff] }
 0x38f   : > { %v1551_v36 = vmul.f32 %v4127_v47, %v4126_v22  ;;  %v3653_v59 = vor.u32 1.1754944e-38, %v1074_v50  ;;  %vm1083_vm8 = vweird.f32 %v3389_v53  ;;  %vm1068_vm11 = vweird.f32 %v3478_v16  ;;  %v4158_v40 = vld [vmem:[#allocation57_spill] sm:$0xff] }
 0x390   : > { %1619 = vmatpush.msrb.mxu2 %v3077_v27  ;;  %1644 = vmatpush.msrb.mxu3 %v1587_v38  ;;  %v1553_v27 = vmul.f32 %v2634_v1, %v3222_v9  ;;  %v1336_v12 = vmul.f32 %v3579_v34, %v1335_v28  ;;  %v4128_v1 = vld [vmem:[#allocation43_spill] sm:$0xff]  ;;  %v1321_v33 = vmul.f32 %v3560_v15, %v1320_v37  ;;  %vm1084_vm12 = vweird.f32 %v3463_v19 }
 0x391   : > { %v3657_v58 = vmul.f32 %v4128_v1, %v3637_v21  ;;  %v3669_v23 = vmul.f32 %v4130_v24, %v3644_v30  ;;  %v1066_v0 = vmul.f32 %v3537_v4, %v1065_v10  ;;  %v1082_v20 = vadd.f32 %v3463_v19, %v1081_v31  ;;  %vm3694_vm2 = vmor %vm1083_vm8, %vm1084_vm12  ;;  %v4146_v24 = vld [vmem:[#allocation18_spill] sm:$0xff]  ;;  %v4154_v28 = vld [vmem:[#allocation39_spill] sm:$0xff] }
 0x392   : > { %1620 = vmatpush.msrb.mxu2 %v3081_v43  ;;  %1645 = vmatpush.msrb.mxu3 %v1585_v48  ;;  %v1089_v43 = vand.u32 2147483648, %v3389_v53  ;;  %v1072_v60 = vand.u32 2147483647, %v3478_v16  ;;  %v1337_v11 = vadd.f32 %v3579_v34, %v1336_v12  ;;  %vm1339_vm13 = vweird.f32 %v3579_v34 }
 0x393   : > { %v2154_v49 = vpop.eup %2153  ;;  %vm3679_vm14 = vcmp.eq.f32.partialorder %v1087_v57, 8.507059e+37  ;;  %vm1324_vm15 = vweird.f32 %v3560_v15  ;;  %v1359_v56 = vand.u32 2147483648, %v3596_v52  ;;  %vm1338_vm0 = vweird.f32 %v3521_v8  ;;  %v4144_v57 = vld [vmem:[#allocation23_spill] sm:$0xff] }
 0x394   : > { %v1349_v61 = vmul.f32 %v2154_v49, %v3596_v52  ;;  %v3664_v17 = vpop.xlane.xlu1 %1016  ;;  %1621 = vmatpush.msrb.mxu2 %v4129_v63  ;;  %1646 = vmatpush.msrb.mxu3 %v1583_v5  ;;  %v1342_v18 = vand.u32 2147483647, %v3521_v8  ;;  %v1344_v26 = vand.u32 2147483648, %v3521_v8  ;;  %vm1354_vm1 = vweird.f32 %v2154_v49  ;;  %vm3700_vm4 = vmor %vm1338_vm0, %vm1339_vm13  ;;  %v3781_v8 = vld [vmem:[%s275_s5] sm:$0xff] }
 0x395   : > { %2155 = vrcp.f32 %v3664_v17  ;;  %v1357_v13 = vand.u32 2147483647, %v3596_v52  ;;  %v1322_v38 = vadd.f32 %v3560_v15, %v1321_v33  ;;  %vm1069_vm3 = vweird.f32 %v3537_v4 }
 0x396   : > { %v1350_v54 = vsub.f32 1.0, %v1349_v61  ;;  %1622 = vmatpush.msrb.mxu2 %v4131_v6  ;;  %vm1323_vm5 = vweird.f32 %v3461_v7  ;;  %v1329_v46 = vand.u32 2147483648, %v3461_v7  ;;  %v1067_v50 = vadd.f32 %v3537_v4, %v1066_v0  ;;  %vm3731_vm12 = vmor %vm1068_vm11, %vm1069_vm3  ;;  %v4148_v6 = vld [vmem:[#allocation4_spill] sm:$0xff] }
 0x397   : > { %vm1353_vm7 = vweird.f32 %v3596_v52  ;;  %v1341_v3 = vsel %vm3700_vm4, %v3579_v34, %v1337_v11  ;;  %vm3714_vm9 = vmor %vm1323_vm5, %vm1324_vm15  ;;  %v1327_v37 = vand.u32 2147483647, %v3461_v7  ;;  %v1360_v44 = vor.u32 1.1754944e-38, %v1359_v56  ;;  %v4150_v56 = vld [vmem:[#allocation25_spill] sm:$0xff]  ;;  %v4164_v7 = vld [vmem:[#allocation47_spill] sm:$0xff] }
 0x398   : > { %v1351_v42 = vmul.f32 %v2154_v49, %v1350_v54  ;;  %1623 = vmatpush.msrb.mxu2 %v4134_v45  ;;  %vm1355_vm6 = vmor %vm1353_vm7, %vm1354_vm1  ;;  %vm1343_vm10 = vcmp.eq.f32.partialorder %v1342_v18, 8.507059e+37  ;;  %v1345_v32 = vor.u32 1.1754944e-38, %v1344_v26  ;;  %v1086_v52 = vsel %vm3694_vm2, %v3463_v19, %v1082_v20  ;;  %v4151_v26 = vld [vmem:[#allocation22_spill] sm:$0xff] }
 0x399   : > { %vm1358_vm8 = vcmp.eq.f32.partialorder %v1357_v13, 8.507059e+37  ;;  %v1326_v10 = vsel %vm3714_vm9, %v3560_v15, %v1322_v38  ;;  %v1090_v5 = vor.u32 1.1754944e-38, %v1089_v43  ;;  %vm1328_vm13 = vcmp.eq.f32.partialorder %v1327_v37, 8.507059e+37  ;;  %v4153_v13 = vld [vmem:[#allocation60_spill] sm:$0xff]  ;;  %v4159_v37 = vld [vmem:[#allocation37_spill] sm:$0xff] }
 0x39a   : > { %1624 = vmatpush.msrb.mxu2 %v4139_v35  ;;  %v1352_v53 = vadd.f32 %v2154_v49, %v1351_v42  ;;  %v3737_v19 = vsel %vm1343_vm10, %v1345_v32, %v1341_v3  ;;  %v1071_v16 = vsel %vm3731_vm12, %v3537_v4, %v1067_v50  ;;  %v1314_v15 = vand.u32 2147483648, %v3664_v17  ;;  %v4152_v42 = vld [vmem:[#allocation41_spill] sm:$0xff]  ;;  %v4161_v32 = vld [vmem:[#allocation27_spill] sm:$0xff] }
 0x39b   : > { %v2156_v48 = vpop.eup %2155  ;;  %v3747_v1 = vsel %vm3679_vm14, %v1090_v5, %v1086_v52  ;;  %vm1073_vm11 = vcmp.eq.f32.partialorder %v1072_v60, 8.507059e+37  ;;  %v1312_v4 = vand.u32 2147483647, %v3664_v17  ;;  %vm1308_vm14 = vweird.f32 %v3664_v17  ;;  %v4156_v35 = vld [vmem:[#allocation45_spill] sm:$0xff] }
 0x39c   : > { %v1304_v34 = vmul.f32 %v2156_v48, %v3664_v17  ;;  %1625 = vmatpush.msrb.mxu2 %v1553_v27  ;;  %v1356_v31 = vsel %vm1355_vm6, %v2154_v49, %v1352_v53  ;;  %v1330_v27 = vor.u32 1.1754944e-38, %v1329_v46  ;;  %vm1309_vm15 = vweird.f32 %v2156_v48  ;;  %v4149_v17 = vld [vmem:[#allocation12_spill] sm:$0xff]  ;;  %v4157_v53 = vld [vmem:[#allocation26_spill] sm:$0xff] }
 0x39d   : > { %v3735_v12 = vsel %vm1358_vm8, %v1360_v44, %v1356_v31  ;;  %v3756_v63 = vsel %vm1073_vm11, %v3653_v59, %v1071_v16  ;;  %v1545_v0 = vmul.f32 %v4146_v24, %v3747_v1  ;;  %vm1310_vm0 = vmor %vm1308_vm14, %vm1309_vm15  ;;  %v1315_v54 = vor.u32 1.1754944e-38, %v1314_v15  ;;  %v3783_v46 = vld [vmem:[%s275_s5 + $0x8] sm:$0xff]  ;;  %v4160_v44 = vld [vmem:[#allocation46_spill] sm:$0xff] }
 0x39e   : > { %v1305_v47 = vsub.f32 1.0, %v1304_v34  ;;  %1626 = vmatpush.msrb.mxu2 %v1551_v36  ;;  %v1581_v49 = vmul.f32 %v4144_v57, %v3735_v12  ;;  %v3749_v33 = vsel %vm1328_vm13, %v1330_v27, %v1326_v10  ;;  %v4145_v36 = vld [vmem:[#allocation7_spill] sm:$0xff]  ;;  %v1543_v59 = vmul.f32 %v4148_v6, %v3756_v63  ;;  %v4162_v34 = vld [vmem:[#allocation58_spill] sm:$0xff]  ;;  %v4166_v27 = vld [vmem:[#allocation61_spill] sm:$0xff] }
 0x39f   : > { %v1579_v61 = vmul.f32 %v4145_v36, %v3737_v19  ;;  %vm1313_vm1 = vcmp.eq.f32.partialorder %v1312_v4, 8.507059e+37  ;;  %v1606_v45 = vmul.f32 %v4152_v42, %v4151_v26  ;;  %v1572_v38 = vmul.f32 %v4154_v28, %v4153_v13  ;;  %v4163_v31 = vld [vmem:[#allocation38_spill] sm:$0xff]  ;;  %v4169_v16 = vld [vmem:[#allocation29_spill] sm:$0xff]  ;;  %v4181_v42 = vld [vmem:[#allocation55_spill] sm:$0xff] }
 0x3a0   : > { %v1306_v43 = vmul.f32 %v2156_v48, %v1305_v47  ;;  %1627 = vmatpush.msrb.mxu2 %v3657_v58  ;;  %1647 = vmatpush.msrb.mxu3 %v1581_v49  ;;  %v4147_v58 = vld [vmem:[#allocation19_spill] sm:$0xff]  ;;  %v1570_v3 = vmul.f32 %v4157_v53, %v4156_v35  ;;  %v1568_v52 = vmul.f32 %v4161_v32, %v4160_v44  ;;  %v4167_v47 = vld [vmem:[#allocation40_spill] sm:$0xff]  ;;  %v4171_v36 = vld [vmem:[#allocation42_spill] sm:$0xff] }
 0x3a1   : > { %v1577_v20 = vmul.f32 %v4147_v58, %v3749_v33  ;;  %v1600_v10 = vmul.f32 %v4163_v31, %v4162_v34  ;;  %v1598_v57 = vmul.f32 %v4167_v47, %v4166_v27  ;;  %v4168_v49 = vld [vmem:[#allocation48_spill] sm:$0xff]  ;;  %v4172_v4 = vld [vmem:[#allocation49_spill] sm:$0xff]  ;;  %v4173_v24 = vld [vmem:[#allocation30_spill] sm:$0xff] }
 0x3a2   : > { %1628 = vmatpush.msrb.mxu2 %v3669_v23  ;;  %1648 = vmatpush.msrb.mxu3 %v1579_v61  ;;  %v1307_v60 = vadd.f32 %v2156_v48, %v1306_v43  ;;  %v1574_v23 = vmul.f32 %v4149_v17, %v3527_v41  ;;  %v4155_v41 = vld [vmem:[#allocation11_spill] sm:$0xff]  ;;  %v1564_v15 = vmul.f32 %v4169_v16, %v4168_v49  ;;  %v4170_v43 = vld [vmem:[#allocation62_spill] sm:$0xff]  ;;  %v4178_v17 = vld [vmem:[#allocation52_spill] sm:$0xff] }
 0x3a3   : > { %v1604_v50 = vmul.f32 %v4155_v41, %v3465_v2  ;;  %v4165_v2 = vld [vmem:[#allocation28_spill] sm:$0xff]  ;;  %v1596_v61 = vmul.f32 %v4171_v36, %v4170_v43  ;;  %v4174_v58 = vld [vmem:[#allocation10_spill] sm:$0xff]  ;;  %v4192_v32 = vld [vmem:[#allocation9_spill] sm:$0xff] }
 0x3a4   : > { %1629 = vmatpush.msrb.mxu2 %v1545_v0  ;;  %1649 = vmatpush.msrb.mxu3 %v1577_v20  ;;  %v1311_v11 = vsel %vm1310_vm0, %v2156_v48, %v1307_v60  ;;  %v1602_v48 = vmul.f32 %v4159_v37, %v4158_v40  ;;  %v1566_v5 = vmul.f32 %v4165_v2, %v4164_v7  ;;  %v4175_v60 = vld [vmem:[#allocation51_spill] sm:$0xff]  ;;  %v4186_v35 = vld [vmem:[#allocation36_spill] sm:$0xff] }
 0x3a5   : > { %v3773_v14 = vsel %vm1313_vm1, %v1315_v54, %v1311_v11  ;;  %v1562_v0 = vmul.f32 %v4173_v24, %v4172_v4  ;;  %v1594_v20 = vmul.f32 %v4174_v58, %v3456_v29  ;;  %v4176_v54 = vld [vmem:[#allocation31_spill] sm:$0xff]  ;;  %v4183_v29 = vld [vmem:[#allocation16_spill] sm:$0xff]  ;;  %v1552_v53 = vmul.f32 %v4186_v35, %v4126_v22 }
 0x3a6   : > { %1630 = vmatpush.msrb.mxu2 %v1543_v59  ;;  %v1575_v18 = vmul.f32 %v4150_v56, %v3773_v14  ;;  %v1560_v6 = vmul.f32 %v4176_v54, %v4175_v60  ;;  %v4177_v59 = vld [vmem:[#allocation17_spill] sm:$0xff]  ;;  %v1588_v28 = vmul.f32 %v4183_v29, %v3584_v25  ;;  %v4188_v40 = vld [vmem:[#allocation44_spill] sm:$0xff]  ;;  %v4194_v34 = vld [vmem:[#allocation15_spill] sm:$0xff] }
 0x3a7   : > { %1631 = vmatmul.f32.vlgmr.msrb.gmra.mxu2 %v3781_v8  ;;  %v1592_v11 = vmul.f32 %v4177_v59, %v3504_v55  ;;  %v4185_v55 = vld [vmem:[#allocation13_spill] sm:$0xff]  ;;  %v1550_v37 = vmul.f32 %v4188_v40, %v3637_v21  ;;  %v4193_v21 = vld [vmem:[#allocation20_spill] sm:$0xff] }
 0x3a8   : > { %1655 = vmatpush.msra.mxu2 %v1574_v23  ;;  %1650 = vmatpush.msrb.mxu3 %v1575_v18  ;;  %v4179_v23 = vld [vmem:[#allocation32_spill] sm:$0xff]  ;;  %v4180_v18 = vld [vmem:[#allocation3_spill] sm:$0xff] }
 0x3a9   : > { %1651 = vmatmul.f32.vlgmr.msrb.gmra.mxu3 %v3783_v46  ;;  %v1558_v56 = vmul.f32 %v4179_v23, %v4178_v17  ;;  %v1590_v26 = vmul.f32 %v4180_v18, %v3543_v62  ;;  %v4187_v62 = vld [vmem:[#allocation14_spill] sm:$0xff] }
 0x3aa   : > { %1656 = vmatpush.msra.mxu2 %v1572_v38  ;;  %1675 = vmatpush.msra.mxu3 %v1606_v45  ;;  %v4182_v45 = vld [vmem:[#allocation33_spill] sm:$0xff]  ;;  %v4184_v38 = vld [vmem:[#allocation34_spill] sm:$0xff] }
 0x3ab   : > { %v1556_v13 = vmul.f32 %v4182_v45, %v4181_v42  ;;  %v1554_v41 = vmul.f32 %v4184_v38, %v3222_v9  ;;  %v4189_v9 = vld [vmem:[#allocation24_spill] sm:$0xff] }
 0x3ac   : > { %1657 = vmatpush.msra.mxu2 %v1570_v3  ;;  %1676 = vmatpush.msra.mxu3 %v1604_v50  ;;  %v1586_v50 = vmul.f32 %v4185_v55, %v3605_v39  ;;  %v1584_v3 = vmul.f32 %v4187_v62, %v3622_v51  ;;  %v1582_v25 = vmul.f32 %v4189_v9, %v3735_v12  ;;  %v4191_v39 = vld [vmem:[#allocation8_spill] sm:$0xff] }
 0x3ad   : > { %v1580_v22 = vmul.f32 %v4191_v39, %v3737_v19  ;;  %v1546_v51 = vmul.f32 %v4192_v32, %v3747_v1  ;;  %v1544_v12 = vmul.f32 %v4194_v34, %v3756_v63 }
 0x3ae   : > { %1658 = vmatpush.msra.mxu2 %v1568_v52  ;;  %1677 = vmatpush.msra.mxu3 %v1602_v48  ;;  %v4190_v48 = vld [vmem:[#allocation6_spill] sm:$0xff]  ;;  %v1578_v52 = vmul.f32 %v4193_v21, %v3749_v33 }
 0x3af   : > { %v1548_v44 = vmul.f32 %v4190_v48, %v3644_v30  ;;  %v4195_v30 = vld [vmem:[#allocation21_spill] sm:$0xff] }
 0x3b0   : > { %1659 = vmatpush.msra.mxu2 %v1566_v5  ;;  %1678 = vmatpush.msra.mxu3 %v1600_v10  ;;  %v1576_v31 = vmul.f32 %v4195_v30, %v3773_v14 }
 0x3b2   : > { %1660 = vmatpush.msra.mxu2 %v1564_v15  ;;  %1679 = vmatpush.msra.mxu3 %v1598_v57 }
 0x3b4   : > { %1661 = vmatpush.msra.mxu2 %v1562_v0  ;;  %1680 = vmatpush.msra.mxu3 %v1596_v61 }
 0x3b6   : > { %1662 = vmatpush.msra.mxu2 %v1560_v6  ;;  %1681 = vmatpush.msra.mxu3 %v1594_v20 }
 0x3b8   : > { %1663 = vmatpush.msra.mxu2 %v1558_v56  ;;  %1682 = vmatpush.msra.mxu3 %v1592_v11 }
 0x3ba   : > { %1664 = vmatpush.msra.mxu2 %v1556_v13  ;;  %1683 = vmatpush.msra.mxu3 %v1590_v26 }
 0x3bc   : > { %1665 = vmatpush.msra.mxu2 %v1554_v41  ;;  %1684 = vmatpush.msra.mxu3 %v1588_v28 }
 0x3be   : > { %1666 = vmatpush.msra.mxu2 %v1552_v53  ;;  %1685 = vmatpush.msra.mxu3 %v1586_v50 }
 0x3c0   : > { %1667 = vmatpush.msra.mxu2 %v1550_v37  ;;  %1686 = vmatpush.msra.mxu3 %v1584_v3 }
 0x3c2   : > { %1668 = vmatpush.msra.mxu2 %v1548_v44  ;;  %1687 = vmatpush.msra.mxu3 %v1582_v25 }
 0x3c4   : > { %1669 = vmatpush.msra.mxu2 %v1546_v51  ;;  %1688 = vmatpush.msra.mxu3 %v1580_v22 }
 0x3c6   : > { %1670 = vmatpush.msra.mxu2 %v1544_v12  ;;  %1689 = vmatpush.msra.mxu3 %v1578_v52 }
 0x3c7   : > { %1671 = vmatmul.f32.vlgmr.msra.gmra.mxu2 %v3781_v8 }
 0x3c8   : > { %1690 = vmatpush.msra.mxu3 %v1576_v31 }
 0x3c9   : > { %1691 = vmatmul.f32.vlgmr.msra.gmra.mxu3 %v3783_v46 }
 0x42a   : > { %v1632_v19 = vpop.f32.mrf.mxu2 }
 0x42c   : > { %v1652_v1 = vpop.f32.mrf.mxu3 }
 0x42d   : > { %v1653_v33 = vadd.f32 %v1652_v1, %v1632_v19 }
 0x42f   : > { %1704 = vst [vmem:[%s285_s8] sm:$0xff] %v1653_v33 }
 0x44a   : > { %v1672_v63 = vpop.f32.mrf.mxu2 }
 0x44c   : > { %v1692_v10 = vpop.f32.mrf.mxu3 }
 0x44d   : > { %v1693_v7 = vadd.f32 %v1692_v10, %v1672_v63 }
 0x44f   : > { %1705 = vst [vmem:[%s285_s8 + $0x8] sm:$0xff] %v1693_v7 }
 0x450 PF: > { %s13_s16 = sadd.s32 1, %s2195_s16   ;;  %s4196_s12 = smov %s2187_s14 }
 0x451   : > { %p10_p7 = scmp.ge.s32.totalorder %s13_s16, 8   ;;  %s4197_s13 = smov %s2191_s15 }
 0x452   : > { %s4198_s14 = smov %s4201_s17  ;;  %s4199_s15 = smov %s4205_s18 }
 0x453   :  { %12 = sbr.rel (!%p10_p7) target bundleno = 3 (0x3), region = 76 }

</bundles_post_ra>
